<compile_context>
chip_gen: v7x
topology: tpu7x:2x2x1
jax: 0.10.0
libtpu: 0.0.40
codegen_flags: <defaults>
</compile_context>

<pallas_src>
import functools

import jax
import jax.numpy as jnp
from jax.experimental import pallas as pl
from jax.experimental.pallas import tpu as pltpu


def _dblock_kernel(x_ref, *refs, n_stage, H, W, cout, cins, dils, dy,
                   mm_dtype):
    """Fused Dblock: n_stage x (dilated 3x3 conv + bias + ReLU) + sum.

    refs = (m_1..m_n, b_1..b_n, o_ref, pad_ref)
      x_ref   : (1, H, W*cin0)          input rows (NHWC flattened over W,C)
      m_i     : (3, W*cin_i, W*cout)    pre-packed per-vertical-tap matrices
      b_i     : (1, W*cout)             bias tiled over W
      o_ref   : (1, H, W*cout)          sum of the ReLU outputs
      pad_ref : (H + 2*dy, W*max(cin))  f32 scratch: h with a zero row halo
    """
    m_refs = refs[:n_stage]
    b_refs = refs[n_stage:2 * n_stage]
    o_ref = refs[2 * n_stage]
    pad_ref = refs[2 * n_stage + 1]

    # Zero the scratch: the halo rows are never written afterwards, so they
    # permanently read back as the conv's zero padding.
    pad_ref[...] = jnp.zeros_like(pad_ref)

    h = x_ref[0].astype(jnp.float32)                       # (H, W*cin0)
    total = jnp.zeros((H, W * cout), jnp.float32)

    for s in range(n_stage):
        d = dils[s]
        wc = W * cins[s]
        acc = jnp.zeros((H, W * cout), jnp.float32)
        if d < H:
            # Vertical taps reach +-d rows: stage h inside the zero-haloed
            # scratch and contract three shifted row blocks on the MXU.
            pad_ref[dy:dy + H, 0:wc] = h[:, 0:wc]
            for ky in range(3):
                if ky == 1:
                    rows = h[:, 0:wc]
                else:
                    r0 = dy + (ky - 1) * d
                    rows = pad_ref[r0:r0 + H, 0:wc]
                acc += jnp.dot(rows.astype(mm_dtype), m_refs[s][ky],
                               preferred_element_type=jnp.float32)
        else:
            # dil >= H: the ky != 1 taps only ever read zero padding -> skip.
            acc += jnp.dot(h[:, 0:wc].astype(mm_dtype), m_refs[s][1],
                           preferred_element_type=jnp.float32)
        h = jnp.maximum(acc + b_refs[s][...], 0.0)         # f32 epilogue
        total += h

    o_ref[0] = total.astype(o_ref.dtype)


def _pack_row_weights(w, dil, W):
    """HWIO (3,3,Cin,Cout) conv weights -> (3, W*Cin, W*Cout) row matrices.

    m[ky, xi*Cin+ci, xo*Cout+co] = w[ky, kx, ci, co] iff xi == xo + (kx-1)*dil
    i.e. the horizontal taps, the dilation shift and the x zero-padding are
    folded into the matrix, so each vertical tap is a single MXU matmul.
    """
    _, _, cin, cout = w.shape
    xi = jnp.arange(W)[:, None]
    xo = jnp.arange(W)[None, :]
    m = jnp.zeros((3, W, cin, W, cout), w.dtype)
    for kx in range(3):
        mask = ((xi - xo) == (kx - 1) * dil).astype(w.dtype)        # (W, W)
        m = m + mask[None, :, None, :, None] * w[:, kx][:, None, :, None, :]
    return m.reshape(3, W * cin, W * cout)


def dblock_forward(x_nchw, params, *, matmul_dtype=jnp.float32):
    """Pallas implementation of Dblock.forward.  Input/output are NCHW."""
    N, c0, H, W = x_nchw.shape
    cout = params[0][0].shape[-1]
    dils = tuple(1 << i for i in range(len(params)))       # 1,2,4,8,16,32
    cins = tuple(w.shape[2] for w, _ in params)
    assert cins[0] == c0

    # ---- pure-JAX glue: pack weights / biases once per call ----
    m_list = [_pack_row_weights(w, d, W).astype(matmul_dtype)
              for (w, _), d in zip(params, dils)]
    b_list = [jnp.tile(b.astype(jnp.float32), W).reshape(1, W * cout)
              for _, b in params]

    # NCHW -> lane-dense (N, H, W*Cin) rows.
    x_rows = jnp.transpose(x_nchw, (0, 2, 3, 1)).reshape(N, H, W * c0)

    # Row halo actually needed: only dilations < H reach outside vertically.
    dy = max([d for d in dils if d < H], default=0)
    cmax = max(cins)

    kernel = functools.partial(
        _dblock_kernel, n_stage=len(params), H=H, W=W, cout=cout,
        cins=cins, dils=dils, dy=dy, mm_dtype=matmul_dtype)

    grid_spec = pltpu.PrefetchScalarGridSpec(
        num_scalar_prefetch=0,
        grid=(N,),
        in_specs=(
            [pl.BlockSpec((1, H, W * c0), lambda n: (n, 0, 0))]
            + [pl.BlockSpec(m.shape, lambda n: (0, 0, 0)) for m in m_list]
            + [pl.BlockSpec(b.shape, lambda n: (0, 0)) for b in b_list]
        ),
        out_specs=pl.BlockSpec((1, H, W * cout), lambda n: (n, 0, 0)),
        scratch_shapes=[pltpu.VMEM((H + 2 * dy, W * cmax), jnp.float32)],
    )

    out_rows = pl.pallas_call(
        kernel,
        out_shape=jax.ShapeDtypeStruct((N, H, W * cout), x_nchw.dtype),
        grid_spec=grid_spec,
        compiler_params=pltpu.CompilerParams(
            dimension_semantics=("parallel",)),
    )(x_rows, *m_list, *b_list)

    # (N, H, W*Cout) -> NHWC -> NCHW
    return jnp.transpose(out_rows.reshape(N, H, W, cout), (0, 3, 1, 2))


def init_dblock_params(key, channel, dtype=jnp.float32):
    """Deterministic synthetic init (biases zeroed as in Dblock.__init__)."""
    cins = [channel // 2] + [channel] * 5
    params = []
    for cin in cins:
        key, sub = jax.random.split(key)
        fan_in = cin * 9
        bound = 1.0 / (fan_in ** 0.5)
        w = jax.random.uniform(sub, (3, 3, cin, channel), dtype,
                               minval=-bound, maxval=bound)
        b = jnp.zeros((channel,), dtype)
        params.append((w, b))
    return params


def dblock_reference(x_nchw, params):
    """Pure-JAX reference (lax.conv_general_dilated) for correctness check."""
    h = jnp.transpose(x_nchw, (0, 2, 3, 1))
    outs = []
    for i, (w, b) in enumerate(params):
        dil = 1 << i
        y = jax.lax.conv_general_dilated(
            h, w, window_strides=(1, 1),
            padding=[(dil, dil), (dil, dil)],
            rhs_dilation=(dil, dil),
            dimension_numbers=("NHWC", "HWIO", "NHWC"))
        h = jnp.maximum(y + b, 0.0)
        outs.append(h)
    return jnp.transpose(sum(outs), (0, 3, 1, 2))


if __name__ == "__main__":
    key = jax.random.PRNGKey(0)
    channel = 8                      # Dblock(channel=8): input has channel//2 = 4
    N, H, W = 2, 16, 16
    key, kx = jax.random.split(key)
    x = jax.random.normal(kx, (N, channel // 2, H, W), jnp.float32)  # NCHW

    params = init_dblock_params(key, channel)

    out = dblock_forward(x, params)
    out = jax.block_until_ready(out)

    ref = dblock_reference(x, params)
    assert out.shape == (N, channel, H, W)
    assert jnp.allclose(out, ref, atol=1e-4, rtol=1e-4)

    print("KERNEL_OK")
</pallas_src>

<mosaic_0001>
module attributes {stable_mosaic.version = 11 : i64} {
  func.func @_dblock_kernel(%arg0: i32, %arg1: memref<1x16x64xf32, #tpu.memory_space<vmem>>, %arg2: memref<3x64x128xf32, #tpu.memory_space<vmem>>, %arg3: memref<3x128x128xf32, #tpu.memory_space<vmem>>, %arg4: memref<3x128x128xf32, #tpu.memory_space<vmem>>, %arg5: memref<3x128x128xf32, #tpu.memory_space<vmem>>, %arg6: memref<3x128x128xf32, #tpu.memory_space<vmem>>, %arg7: memref<3x128x128xf32, #tpu.memory_space<vmem>>, %arg8: memref<1x128xf32, #tpu.memory_space<vmem>>, %arg9: memref<1x128xf32, #tpu.memory_space<vmem>>, %arg10: memref<1x128xf32, #tpu.memory_space<vmem>>, %arg11: memref<1x128xf32, #tpu.memory_space<vmem>>, %arg12: memref<1x128xf32, #tpu.memory_space<vmem>>, %arg13: memref<1x128xf32, #tpu.memory_space<vmem>>, %arg14: memref<1x16x128xf32, #tpu.memory_space<vmem>>, %arg15: memref<32x128xf32, #tpu.memory_space<vmem>>) attributes {dimension_semantics = [#tpu.dimension_semantics<parallel>], iteration_bounds = array<i64: 2>, scalar_prefetch = 0 : i64, scratch_operands = 1 : i64, tpu.core_type = #tpu.core_type<tc>, window_params = [{transform_indices = @transform_0, window_bounds = array<i64: 1, 16, 64>}, {pipeline_mode = #tpu.pipeline_mode<synchronous>, transform_indices = @transform_1, window_bounds = array<i64: 3, 64, 128>}, {pipeline_mode = #tpu.pipeline_mode<synchronous>, transform_indices = @transform_2, window_bounds = array<i64: 3, 128, 128>}, {pipeline_mode = #tpu.pipeline_mode<synchronous>, transform_indices = @transform_3, window_bounds = array<i64: 3, 128, 128>}, {pipeline_mode = #tpu.pipeline_mode<synchronous>, transform_indices = @transform_4, window_bounds = array<i64: 3, 128, 128>}, {pipeline_mode = #tpu.pipeline_mode<synchronous>, transform_indices = @transform_5, window_bounds = array<i64: 3, 128, 128>}, {pipeline_mode = #tpu.pipeline_mode<synchronous>, transform_indices = @transform_6, window_bounds = array<i64: 3, 128, 128>}, {pipeline_mode = #tpu.pipeline_mode<synchronous>, transform_indices = @transform_7, window_bounds = array<i64: 1, 128>}, {pipeline_mode = #tpu.pipeline_mode<synchronous>, transform_indices = @transform_8, window_bounds = array<i64: 1, 128>}, {pipeline_mode = #tpu.pipeline_mode<synchronous>, transform_indices = @transform_9, window_bounds = array<i64: 1, 128>}, {pipeline_mode = #tpu.pipeline_mode<synchronous>, transform_indices = @transform_10, window_bounds = array<i64: 1, 128>}, {pipeline_mode = #tpu.pipeline_mode<synchronous>, transform_indices = @transform_11, window_bounds = array<i64: 1, 128>}, {pipeline_mode = #tpu.pipeline_mode<synchronous>, transform_indices = @transform_12, window_bounds = array<i64: 1, 128>}, {transform_indices = @transform_13, window_bounds = array<i64: 1, 16, 128>}]} {
    %cst = arith.constant 0.000000e+00 : f32
    %0 = vector.broadcast %cst : f32 to vector<32x128xf32>
    %c0 = arith.constant 0 : index
    %c0_0 = arith.constant 0 : index
    %1 = vector.load %arg15[%c0, %c0_0] : memref<32x128xf32, #tpu.memory_space<vmem>>, vector<32x128xf32>
    tpu.vector_store %arg15[%c0, %c0_0], %0 {strides = array<i32>} : memref<32x128xf32, #tpu.memory_space<vmem>>, vector<32x128xf32>,
    %c0_1 = arith.constant 0 : index
    %c0_2 = arith.constant 0 : index
    %c0_3 = arith.constant 0 : index
    %2 = vector.load %arg1[%c0_1, %c0_2, %c0_3] : memref<1x16x64xf32, #tpu.memory_space<vmem>>, vector<1x16x64xf32>
    %3 = vector.shape_cast %2 : vector<1x16x64xf32> to vector<16x64xf32>
    %cst_4 = arith.constant 0.000000e+00 : f32
    %4 = vector.broadcast %cst_4 : f32 to vector<16x128xf32>
    %cst_5 = arith.constant 0.000000e+00 : f32
    %5 = vector.broadcast %cst_5 : f32 to vector<16x128xf32>
    %c8 = arith.constant 8 : index
    %c0_6 = arith.constant 0 : index
    %6 = vector.load %arg15[%c8, %c0_6] : memref<32x128xf32, #tpu.memory_space<vmem>>, vector<16x64xf32>
    tpu.vector_store %arg15[%c8, %c0_6], %3 {strides = array<i32>} : memref<32x128xf32, #tpu.memory_space<vmem>>, vector<16x64xf32>,
    %c7 = arith.constant 7 : index
    %c0_7 = arith.constant 0 : index
    %7 = vector.load %arg15[%c7, %c0_7] : memref<32x128xf32, #tpu.memory_space<vmem>>, vector<16x64xf32>
    %c0_8 = arith.constant 0 : index
    %c0_9 = arith.constant 0 : index
    %c0_10 = arith.constant 0 : index
    %8 = vector.load %arg2[%c0_8, %c0_9, %c0_10] : memref<3x64x128xf32, #tpu.memory_space<vmem>>, vector<1x64x128xf32>
    %9 = vector.shape_cast %8 : vector<1x64x128xf32> to vector<64x128xf32>
    %cst_11 = arith.constant dense<0.000000e+00> : vector<16x128xf32>
    %10 = tpu.matmul %7, %9, %cst_11 {dimension_numbers = #tpu.dot_dimension_numbers<[1], [0], [0], [1], [0, 0, 1, 1], [], []>} : vector<16x64xf32>, vector<64x128xf32>, vector<16x128xf32> -> vector<16x128xf32>
    %11 = arith.addf %5, %10 : vector<16x128xf32>
    %c1 = arith.constant 1 : index
    %c0_12 = arith.constant 0 : index
    %c0_13 = arith.constant 0 : index
    %12 = vector.load %arg2[%c1, %c0_12, %c0_13] : memref<3x64x128xf32, #tpu.memory_space<vmem>>, vector<1x64x128xf32>
    %13 = vector.shape_cast %12 : vector<1x64x128xf32> to vector<64x128xf32>
    %cst_14 = arith.constant dense<0.000000e+00> : vector<16x128xf32>
    %14 = tpu.matmul %3, %13, %cst_14 {dimension_numbers = #tpu.dot_dimension_numbers<[1], [0], [0], [1], [0, 0, 1, 1], [], []>} : vector<16x64xf32>, vector<64x128xf32>, vector<16x128xf32> -> vector<16x128xf32>
    %15 = arith.addf %11, %14 : vector<16x128xf32>
    %c9 = arith.constant 9 : index
    %c0_15 = arith.constant 0 : index
    %16 = vector.load %arg15[%c9, %c0_15] : memref<32x128xf32, #tpu.memory_space<vmem>>, vector<16x64xf32>
    %c2 = arith.constant 2 : index
    %c0_16 = arith.constant 0 : index
    %c0_17 = arith.constant 0 : index
    %17 = vector.load %arg2[%c2, %c0_16, %c0_17] : memref<3x64x128xf32, #tpu.memory_space<vmem>>, vector<1x64x128xf32>
    %18 = vector.shape_cast %17 : vector<1x64x128xf32> to vector<64x128xf32>
    %cst_18 = arith.constant dense<0.000000e+00> : vector<16x128xf32>
    %19 = tpu.matmul %16, %18, %cst_18 {dimension_numbers = #tpu.dot_dimension_numbers<[1], [0], [0], [1], [0, 0, 1, 1], [], []>} : vector<16x64xf32>, vector<64x128xf32>, vector<16x128xf32> -> vector<16x128xf32>
    %20 = arith.addf %15, %19 : vector<16x128xf32>
    %c0_19 = arith.constant 0 : index
    %c0_20 = arith.constant 0 : index
    %21 = vector.load %arg8[%c0_19, %c0_20] : memref<1x128xf32, #tpu.memory_space<vmem>>, vector<1x128xf32>
    %22 = vector.broadcast %21 : vector<1x128xf32> to vector<16x128xf32>
    %23 = arith.addf %20, %22 : vector<16x128xf32>
    %cst_21 = arith.constant 0.000000e+00 : f32
    %24 = vector.broadcast %cst_21 : f32 to vector<16x128xf32>
    %25 = arith.maximumf %23, %24 : vector<16x128xf32>
    %26 = arith.addf %4, %25 : vector<16x128xf32>
    %cst_22 = arith.constant 0.000000e+00 : f32
    %27 = vector.broadcast %cst_22 : f32 to vector<16x128xf32>
    %c8_23 = arith.constant 8 : index
    %c0_24 = arith.constant 0 : index
    %28 = vector.load %arg15[%c8_23, %c0_24] : memref<32x128xf32, #tpu.memory_space<vmem>>, vector<16x128xf32>
    tpu.vector_store %arg15[%c8_23, %c0_24], %25 {strides = array<i32>} : memref<32x128xf32, #tpu.memory_space<vmem>>, vector<16x128xf32>,
    %c6 = arith.constant 6 : index
    %c0_25 = arith.constant 0 : index
    %29 = vector.load %arg15[%c6, %c0_25] : memref<32x128xf32, #tpu.memory_space<vmem>>, vector<16x128xf32>
    %c0_26 = arith.constant 0 : index
    %c0_27 = arith.constant 0 : index
    %c0_28 = arith.constant 0 : index
    %30 = vector.load %arg3[%c0_26, %c0_27, %c0_28] : memref<3x128x128xf32, #tpu.memory_space<vmem>>, vector<1x128x128xf32>
    %31 = vector.shape_cast %30 : vector<1x128x128xf32> to vector<128x128xf32>
    %cst_29 = arith.constant dense<0.000000e+00> : vector<16x128xf32>
    %32 = tpu.matmul %29, %31, %cst_29 {dimension_numbers = #tpu.dot_dimension_numbers<[1], [0], [0], [1], [0, 0, 1, 1], [], []>} : vector<16x128xf32>, vector<128x128xf32>, vector<16x128xf32> -> vector<16x128xf32>
    %33 = arith.addf %27, %32 : vector<16x128xf32>
    %c1_30 = arith.constant 1 : index
    %c0_31 = arith.constant 0 : index
    %c0_32 = arith.constant 0 : index
    %34 = vector.load %arg3[%c1_30, %c0_31, %c0_32] : memref<3x128x128xf32, #tpu.memory_space<vmem>>, vector<1x128x128xf32>
    %35 = vector.shape_cast %34 : vector<1x128x128xf32> to vector<128x128xf32>
    %cst_33 = arith.constant dense<0.000000e+00> : vector<16x128xf32>
    %36 = tpu.matmul %25, %35, %cst_33 {dimension_numbers = #tpu.dot_dimension_numbers<[1], [0], [0], [1], [0, 0, 1, 1], [], []>} : vector<16x128xf32>, vector<128x128xf32>, vector<16x128xf32> -> vector<16x128xf32>
    %37 = arith.addf %33, %36 : vector<16x128xf32>
    %c10 = arith.constant 10 : index
    %c0_34 = arith.constant 0 : index
    %38 = vector.load %arg15[%c10, %c0_34] : memref<32x128xf32, #tpu.memory_space<vmem>>, vector<16x128xf32>
    %c2_35 = arith.constant 2 : index
    %c0_36 = arith.constant 0 : index
    %c0_37 = arith.constant 0 : index
    %39 = vector.load %arg3[%c2_35, %c0_36, %c0_37] : memref<3x128x128xf32, #tpu.memory_space<vmem>>, vector<1x128x128xf32>
    %40 = vector.shape_cast %39 : vector<1x128x128xf32> to vector<128x128xf32>
    %cst_38 = arith.constant dense<0.000000e+00> : vector<16x128xf32>
    %41 = tpu.matmul %38, %40, %cst_38 {dimension_numbers = #tpu.dot_dimension_numbers<[1], [0], [0], [1], [0, 0, 1, 1], [], []>} : vector<16x128xf32>, vector<128x128xf32>, vector<16x128xf32> -> vector<16x128xf32>
    %42 = arith.addf %37, %41 : vector<16x128xf32>
    %c0_39 = arith.constant 0 : index
    %c0_40 = arith.constant 0 : index
    %43 = vector.load %arg9[%c0_39, %c0_40] : memref<1x128xf32, #tpu.memory_space<vmem>>, vector<1x128xf32>
    %44 = vector.broadcast %43 : vector<1x128xf32> to vector<16x128xf32>
    %45 = arith.addf %42, %44 : vector<16x128xf32>
    %cst_41 = arith.constant 0.000000e+00 : f32
    %46 = vector.broadcast %cst_41 : f32 to vector<16x128xf32>
    %47 = arith.maximumf %45, %46 : vector<16x128xf32>
    %48 = arith.addf %26, %47 : vector<16x128xf32>
    %cst_42 = arith.constant 0.000000e+00 : f32
    %49 = vector.broadcast %cst_42 : f32 to vector<16x128xf32>
    %c8_43 = arith.constant 8 : index
    %c0_44 = arith.constant 0 : index
    %50 = vector.load %arg15[%c8_43, %c0_44] : memref<32x128xf32, #tpu.memory_space<vmem>>, vector<16x128xf32>
    tpu.vector_store %arg15[%c8_43, %c0_44], %47 {strides = array<i32>} : memref<32x128xf32, #tpu.memory_space<vmem>>, vector<16x128xf32>,
    %c4 = arith.constant 4 : index
    %c0_45 = arith.constant 0 : index
    %51 = vector.load %arg15[%c4, %c0_45] : memref<32x128xf32, #tpu.memory_space<vmem>>, vector<16x128xf32>
    %c0_46 = arith.constant 0 : index
    %c0_47 = arith.constant 0 : index
    %c0_48 = arith.constant 0 : index
    %52 = vector.load %arg4[%c0_46, %c0_47, %c0_48] : memref<3x128x128xf32, #tpu.memory_space<vmem>>, vector<1x128x128xf32>
    %53 = vector.shape_cast %52 : vector<1x128x128xf32> to vector<128x128xf32>
    %cst_49 = arith.constant dense<0.000000e+00> : vector<16x128xf32>
    %54 = tpu.matmul %51, %53, %cst_49 {dimension_numbers = #tpu.dot_dimension_numbers<[1], [0], [0], [1], [0, 0, 1, 1], [], []>} : vector<16x128xf32>, vector<128x128xf32>, vector<16x128xf32> -> vector<16x128xf32>
    %55 = arith.addf %49, %54 : vector<16x128xf32>
    %c1_50 = arith.constant 1 : index
    %c0_51 = arith.constant 0 : index
    %c0_52 = arith.constant 0 : index
    %56 = vector.load %arg4[%c1_50, %c0_51, %c0_52] : memref<3x128x128xf32, #tpu.memory_space<vmem>>, vector<1x128x128xf32>
    %57 = vector.shape_cast %56 : vector<1x128x128xf32> to vector<128x128xf32>
    %cst_53 = arith.constant dense<0.000000e+00> : vector<16x128xf32>
    %58 = tpu.matmul %47, %57, %cst_53 {dimension_numbers = #tpu.dot_dimension_numbers<[1], [0], [0], [1], [0, 0, 1, 1], [], []>} : vector<16x128xf32>, vector<128x128xf32>, vector<16x128xf32> -> vector<16x128xf32>
    %59 = arith.addf %55, %58 : vector<16x128xf32>
    %c12 = arith.constant 12 : index
    %c0_54 = arith.constant 0 : index
    %60 = vector.load %arg15[%c12, %c0_54] : memref<32x128xf32, #tpu.memory_space<vmem>>, vector<16x128xf32>
    %c2_55 = arith.constant 2 : index
    %c0_56 = arith.constant 0 : index
    %c0_57 = arith.constant 0 : index
    %61 = vector.load %arg4[%c2_55, %c0_56, %c0_57] : memref<3x128x128xf32, #tpu.memory_space<vmem>>, vector<1x128x128xf32>
    %62 = vector.shape_cast %61 : vector<1x128x128xf32> to vector<128x128xf32>
    %cst_58 = arith.constant dense<0.000000e+00> : vector<16x128xf32>
    %63 = tpu.matmul %60, %62, %cst_58 {dimension_numbers = #tpu.dot_dimension_numbers<[1], [0], [0], [1], [0, 0, 1, 1], [], []>} : vector<16x128xf32>, vector<128x128xf32>, vector<16x128xf32> -> vector<16x128xf32>
    %64 = arith.addf %59, %63 : vector<16x128xf32>
    %c0_59 = arith.constant 0 : index
    %c0_60 = arith.constant 0 : index
    %65 = vector.load %arg10[%c0_59, %c0_60] : memref<1x128xf32, #tpu.memory_space<vmem>>, vector<1x128xf32>
    %66 = vector.broadcast %65 : vector<1x128xf32> to vector<16x128xf32>
    %67 = arith.addf %64, %66 : vector<16x128xf32>
    %cst_61 = arith.constant 0.000000e+00 : f32
    %68 = vector.broadcast %cst_61 : f32 to vector<16x128xf32>
    %69 = arith.maximumf %67, %68 : vector<16x128xf32>
    %70 = arith.addf %48, %69 : vector<16x128xf32>
    %cst_62 = arith.constant 0.000000e+00 : f32
    %71 = vector.broadcast %cst_62 : f32 to vector<16x128xf32>
    %c8_63 = arith.constant 8 : index
    %c0_64 = arith.constant 0 : index
    %72 = vector.load %arg15[%c8_63, %c0_64] : memref<32x128xf32, #tpu.memory_space<vmem>>, vector<16x128xf32>
    tpu.vector_store %arg15[%c8_63, %c0_64], %69 {strides = array<i32>} : memref<32x128xf32, #tpu.memory_space<vmem>>, vector<16x128xf32>,
    %c0_65 = arith.constant 0 : index
    %c0_66 = arith.constant 0 : index
    %73 = vector.load %arg15[%c0_65, %c0_66] : memref<32x128xf32, #tpu.memory_space<vmem>>, vector<16x128xf32>
    %c0_67 = arith.constant 0 : index
    %c0_68 = arith.constant 0 : index
    %c0_69 = arith.constant 0 : index
    %74 = vector.load %arg5[%c0_67, %c0_68, %c0_69] : memref<3x128x128xf32, #tpu.memory_space<vmem>>, vector<1x128x128xf32>
    %75 = vector.shape_cast %74 : vector<1x128x128xf32> to vector<128x128xf32>
    %cst_70 = arith.constant dense<0.000000e+00> : vector<16x128xf32>
    %76 = tpu.matmul %73, %75, %cst_70 {dimension_numbers = #tpu.dot_dimension_numbers<[1], [0], [0], [1], [0, 0, 1, 1], [], []>} : vector<16x128xf32>, vector<128x128xf32>, vector<16x128xf32> -> vector<16x128xf32>
    %77 = arith.addf %71, %76 : vector<16x128xf32>
    %c1_71 = arith.constant 1 : index
    %c0_72 = arith.constant 0 : index
    %c0_73 = arith.constant 0 : index
    %78 = vector.load %arg5[%c1_71, %c0_72, %c0_73] : memref<3x128x128xf32, #tpu.memory_space<vmem>>, vector<1x128x128xf32>
    %79 = vector.shape_cast %78 : vector<1x128x128xf32> to vector<128x128xf32>
    %cst_74 = arith.constant dense<0.000000e+00> : vector<16x128xf32>
    %80 = tpu.matmul %69, %79, %cst_74 {dimension_numbers = #tpu.dot_dimension_numbers<[1], [0], [0], [1], [0, 0, 1, 1], [], []>} : vector<16x128xf32>, vector<128x128xf32>, vector<16x128xf32> -> vector<16x128xf32>
    %81 = arith.addf %77, %80 : vector<16x128xf32>
    %c16 = arith.constant 16 : index
    %c0_75 = arith.constant 0 : index
    %82 = vector.load %arg15[%c16, %c0_75] : memref<32x128xf32, #tpu.memory_space<vmem>>, vector<16x128xf32>
    %c2_76 = arith.constant 2 : index
    %c0_77 = arith.constant 0 : index
    %c0_78 = arith.constant 0 : index
    %83 = vector.load %arg5[%c2_76, %c0_77, %c0_78] : memref<3x128x128xf32, #tpu.memory_space<vmem>>, vector<1x128x128xf32>
    %84 = vector.shape_cast %83 : vector<1x128x128xf32> to vector<128x128xf32>
    %cst_79 = arith.constant dense<0.000000e+00> : vector<16x128xf32>
    %85 = tpu.matmul %82, %84, %cst_79 {dimension_numbers = #tpu.dot_dimension_numbers<[1], [0], [0], [1], [0, 0, 1, 1], [], []>} : vector<16x128xf32>, vector<128x128xf32>, vector<16x128xf32> -> vector<16x128xf32>
    %86 = arith.addf %81, %85 : vector<16x128xf32>
    %c0_80 = arith.constant 0 : index
    %c0_81 = arith.constant 0 : index
    %87 = vector.load %arg11[%c0_80, %c0_81] : memref<1x128xf32, #tpu.memory_space<vmem>>, vector<1x128xf32>
    %88 = vector.broadcast %87 : vector<1x128xf32> to vector<16x128xf32>
    %89 = arith.addf %86, %88 : vector<16x128xf32>
    %cst_82 = arith.constant 0.000000e+00 : f32
    %90 = vector.broadcast %cst_82 : f32 to vector<16x128xf32>
    %91 = arith.maximumf %89, %90 : vector<16x128xf32>
    %92 = arith.addf %70, %91 : vector<16x128xf32>
    %cst_83 = arith.constant 0.000000e+00 : f32
    %93 = vector.broadcast %cst_83 : f32 to vector<16x128xf32>
    %c1_84 = arith.constant 1 : index
    %c0_85 = arith.constant 0 : index
    %c0_86 = arith.constant 0 : index
    %94 = vector.load %arg6[%c1_84, %c0_85, %c0_86] : memref<3x128x128xf32, #tpu.memory_space<vmem>>, vector<1x128x128xf32>
    %95 = vector.shape_cast %94 : vector<1x128x128xf32> to vector<128x128xf32>
    %cst_87 = arith.constant dense<0.000000e+00> : vector<16x128xf32>
    %96 = tpu.matmul %91, %95, %cst_87 {dimension_numbers = #tpu.dot_dimension_numbers<[1], [0], [0], [1], [0, 0, 1, 1], [], []>} : vector<16x128xf32>, vector<128x128xf32>, vector<16x128xf32> -> vector<16x128xf32>
    %97 = arith.addf %93, %96 : vector<16x128xf32>
    %c0_88 = arith.constant 0 : index
    %c0_89 = arith.constant 0 : index
    %98 = vector.load %arg12[%c0_88, %c0_89] : memref<1x128xf32, #tpu.memory_space<vmem>>, vector<1x128xf32>
    %99 = vector.broadcast %98 : vector<1x128xf32> to vector<16x128xf32>
    %100 = arith.addf %97, %99 : vector<16x128xf32>
    %cst_90 = arith.constant 0.000000e+00 : f32
    %101 = vector.broadcast %cst_90 : f32 to vector<16x128xf32>
    %102 = arith.maximumf %100, %101 : vector<16x128xf32>
    %103 = arith.addf %92, %102 : vector<16x128xf32>
    %cst_91 = arith.constant 0.000000e+00 : f32
    %104 = vector.broadcast %cst_91 : f32 to vector<16x128xf32>
    %c1_92 = arith.constant 1 : index
    %c0_93 = arith.constant 0 : index
    %c0_94 = arith.constant 0 : index
    %105 = vector.load %arg7[%c1_92, %c0_93, %c0_94] : memref<3x128x128xf32, #tpu.memory_space<vmem>>, vector<1x128x128xf32>
    %106 = vector.shape_cast %105 : vector<1x128x128xf32> to vector<128x128xf32>
    %cst_95 = arith.constant dense<0.000000e+00> : vector<16x128xf32>
    %107 = tpu.matmul %102, %106, %cst_95 {dimension_numbers = #tpu.dot_dimension_numbers<[1], [0], [0], [1], [0, 0, 1, 1], [], []>} : vector<16x128xf32>, vector<128x128xf32>, vector<16x128xf32> -> vector<16x128xf32>
    %108 = arith.addf %104, %107 : vector<16x128xf32>
    %c0_96 = arith.constant 0 : index
    %c0_97 = arith.constant 0 : index
    %109 = vector.load %arg13[%c0_96, %c0_97] : memref<1x128xf32, #tpu.memory_space<vmem>>, vector<1x128xf32>
    %110 = vector.broadcast %109 : vector<1x128xf32> to vector<16x128xf32>
    %111 = arith.addf %108, %110 : vector<16x128xf32>
    %cst_98 = arith.constant 0.000000e+00 : f32
    %112 = vector.broadcast %cst_98 : f32 to vector<16x128xf32>
    %113 = arith.maximumf %111, %112 : vector<16x128xf32>
    %114 = arith.addf %103, %113 : vector<16x128xf32>
    %c0_99 = arith.constant 0 : index
    %c0_100 = arith.constant 0 : index
    %c0_101 = arith.constant 0 : index
    %115 = vector.load %arg14[%c0_99, %c0_100, %c0_101] : memref<1x16x128xf32, #tpu.memory_space<vmem>>, vector<1x16x128xf32>
    %116 = vector.shape_cast %115 : vector<1x16x128xf32> to vector<16x128xf32>
    %117 = vector.shape_cast %114 : vector<16x128xf32> to vector<1x16x128xf32>
    tpu.vector_store %arg14[%c0_99, %c0_100, %c0_101], %117 {strides = array<i32>} : memref<1x16x128xf32, #tpu.memory_space<vmem>>, vector<1x16x128xf32>,
    return
  }
  func.func @transform_0(%arg0: i32) -> (i32, i32, i32) {
    %c0_i32 = arith.constant 0 : i32
    %c0_i32_0 = arith.constant 0 : i32
    %c0_i32_1 = arith.constant 0 : i32
    return %arg0, %c0_i32, %c0_i32_0 : i32, i32, i32
  }
  func.func @transform_1(%arg0: i32) -> (i32, i32, i32) {
    %c0_i32 = arith.constant 0 : i32
    %c0_i32_0 = arith.constant 0 : i32
    %c0_i32_1 = arith.constant 0 : i32
    %c0_i32_2 = arith.constant 0 : i32
    return %c0_i32, %c0_i32_0, %c0_i32_1 : i32, i32, i32
  }
  func.func @transform_2(%arg0: i32) -> (i32, i32, i32) {
    %c0_i32 = arith.constant 0 : i32
    %c0_i32_0 = arith.constant 0 : i32
    %c0_i32_1 = arith.constant 0 : i32
    %c0_i32_2 = arith.constant 0 : i32
    return %c0_i32, %c0_i32_0, %c0_i32_1 : i32, i32, i32
  }
  func.func @transform_3(%arg0: i32) -> (i32, i32, i32) {
    %c0_i32 = arith.constant 0 : i32
    %c0_i32_0 = arith.constant 0 : i32
    %c0_i32_1 = arith.constant 0 : i32
    %c0_i32_2 = arith.constant 0 : i32
    return %c0_i32, %c0_i32_0, %c0_i32_1 : i32, i32, i32
  }
  func.func @transform_4(%arg0: i32) -> (i32, i32, i32) {
    %c0_i32 = arith.constant 0 : i32
    %c0_i32_0 = arith.constant 0 : i32
    %c0_i32_1 = arith.constant 0 : i32
    %c0_i32_2 = arith.constant 0 : i32
    return %c0_i32, %c0_i32_0, %c0_i32_1 : i32, i32, i32
  }
  func.func @transform_5(%arg0: i32) -> (i32, i32, i32) {
    %c0_i32 = arith.constant 0 : i32
    %c0_i32_0 = arith.constant 0 : i32
    %c0_i32_1 = arith.constant 0 : i32
    %c0_i32_2 = arith.constant 0 : i32
    return %c0_i32, %c0_i32_0, %c0_i32_1 : i32, i32, i32
  }
  func.func @transform_6(%arg0: i32) -> (i32, i32, i32) {
    %c0_i32 = arith.constant 0 : i32
    %c0_i32_0 = arith.constant 0 : i32
    %c0_i32_1 = arith.constant 0 : i32
    %c0_i32_2 = arith.constant 0 : i32
    return %c0_i32, %c0_i32_0, %c0_i32_1 : i32, i32, i32
  }
  func.func @transform_7(%arg0: i32) -> (i32, i32) {
    %c0_i32 = arith.constant 0 : i32
    %c0_i32_0 = arith.constant 0 : i32
    %c0_i32_1 = arith.constant 0 : i32
    return %c0_i32, %c0_i32_0 : i32, i32
  }
  func.func @transform_8(%arg0: i32) -> (i32, i32) {
    %c0_i32 = arith.constant 0 : i32
    %c0_i32_0 = arith.constant 0 : i32
    %c0_i32_1 = arith.constant 0 : i32
    return %c0_i32, %c0_i32_0 : i32, i32
  }
  func.func @transform_9(%arg0: i32) -> (i32, i32) {
    %c0_i32 = arith.constant 0 : i32
    %c0_i32_0 = arith.constant 0 : i32
    %c0_i32_1 = arith.constant 0 : i32
    return %c0_i32, %c0_i32_0 : i32, i32
  }
  func.func @transform_10(%arg0: i32) -> (i32, i32) {
    %c0_i32 = arith.constant 0 : i32
    %c0_i32_0 = arith.constant 0 : i32
    %c0_i32_1 = arith.constant 0 : i32
    return %c0_i32, %c0_i32_0 : i32, i32
  }
  func.func @transform_11(%arg0: i32) -> (i32, i32) {
    %c0_i32 = arith.constant 0 : i32
    %c0_i32_0 = arith.constant 0 : i32
    %c0_i32_1 = arith.constant 0 : i32
    return %c0_i32, %c0_i32_0 : i32, i32
  }
  func.func @transform_12(%arg0: i32) -> (i32, i32) {
    %c0_i32 = arith.constant 0 : i32
    %c0_i32_0 = arith.constant 0 : i32
    %c0_i32_1 = arith.constant 0 : i32
    return %c0_i32, %c0_i32_0 : i32, i32
  }
  func.func @transform_13(%arg0: i32) -> (i32, i32, i32) {
    %c0_i32 = arith.constant 0 : i32
    %c0_i32_0 = arith.constant 0 : i32
    %c0_i32_1 = arith.constant 0 : i32
    return %arg0, %c0_i32, %c0_i32_0 : i32, i32, i32
  }
}

</mosaic_0001>

<bundles_post_ra>
// kernel: tpu_custom_call.1
= control target key start
LH: loop header
LB: loop body
LE: loop exit
PB: predicated region body
PF: predicated region fallthrough
CT: control target
= control target key end

     0   :  { %s4090_s0 = inlined_call_operand.hbm [shape: f32[2,16,64], index: 0, kind: input, shape index: {}]   ;;  %s4091_s1 = inlined_call_operand.hbm [shape: f32[3,64,128], index: 1, kind: input, shape index: {}]   ;;  %s4092_s2 = inlined_call_operand.hbm [shape: f32[3,128,128], index: 2, kind: input, shape index: {}]   ;;  %s4093_s3 = inlined_call_operand.hbm [shape: f32[3,128,128], index: 3, kind: input, shape index: {}]   ;;  %s4094_s4 = inlined_call_operand.hbm [shape: f32[3,128,128], index: 4, kind: input, shape index: {}]   ;;  %s4095_s5 = inlined_call_operand.hbm [shape: f32[3,128,128], index: 5, kind: input, shape index: {}]   ;;  %s4096_s6 = inlined_call_operand.hbm [shape: f32[3,128,128], index: 6, kind: input, shape index: {}]   ;;  %s4097_s7 = inlined_call_operand.vmem [shape: f32[1,128], index: 7, kind: input, shape index: {}]   ;;  %s4098_s8 = inlined_call_operand.vmem [shape: f32[1,128], index: 8, kind: input, shape index: {}]   ;;  %s4099_s9 = inlined_call_operand.vmem [shape: f32[1,128], index: 9, kind: input, shape index: {}]   ;;  %s4100_s10 = inlined_call_operand.vmem [shape: f32[1,128], index: 10, kind: input, shape index: {}]   ;;  %s4101_s11 = inlined_call_operand.vmem [shape: f32[1,128], index: 11, kind: input, shape index: {}]   ;;  %s4102_s12 = inlined_call_operand.vmem [shape: f32[1,128], index: 12, kind: input, shape index: {}]   ;;  %s4103_s13 = inlined_call_operand.hbm [shape: f32[2,16,128], index: 13, kind: output, shape index: {}]  }
   0x1   :  { %4109 = sst [smem:[#allocation21_spill]] %s4091_s1 }
   0x2   :  { %4110 = sst [smem:[#allocation22_spill]] %s4099_s9 }
   0x3   :  { %4111 = sst [smem:[#allocation23_spill]] %s4100_s10 }
   0x4   :  { %4112 = sst [smem:[#allocation24_spill]] %s4101_s11 }
   0x5   :  { %4113 = sst [smem:[#allocation25_spill]] %s4102_s12 }
   0x6   :  { %4114 = sst [smem:[#allocation26_spill]] %s4103_s13 }
   0x7   :  { %18 = vsyncpa [#allocation4], 0 }
   0x8   :  { %20 = vsyncpa [#allocation4 + $0x1], 0 }
   0x9   :  { %21 = vsyncpa [#allocation7], 0 }
   0xa   :  { %22 = vsyncpa [#allocation10], 0 }
   0xb   :  { %23 = vsyncpa [#allocation13], 0 }
   0xc   :  { %24 = vsyncpa [#allocation5], 0 }
   0xd   :  { %26 = vsyncpa [#allocation5 + $0x1], 0  ;;  %s3683_s25 = smov 0   ;;  %s3685_s26 = smov 0  }
   0xe   :  { %s3687_s27 = smov 0   ;;  %s3689_s28 = smov 0  }
   0xf LB: > { %s3600_s29 = smov [#allocation6]   ;;  %s3704_s14 = sadd.s32 4294967295, %s3598_s28   ;;  %s3598_s28 = sphi %s3689_s28, %s4144_s28   ;;  %s3594_s27 = sphi %s3687_s27, %s4143_s27   ;;  %s3590_s26 = sphi %s3685_s26, %s4142_s26   ;;  %s3586_s25 = sphi %s3683_s25, %s4141_s25  }
  0x10   : > { %s353_s30 = sshll.u32 %s3600_s29, 4  ;;  %p2084_p0 = scmp.ge.s32.totalorder %s3598_s28, 1  ;;  %s3709_s30 = int_to_ptr.vmem [resolvable:$true] %s353_s30 }
  0x11   : > { %p4105_p1 = scmp.eq.s32.totalorder %s3704_s14, 0  ;;  %p341_p2 = scmp.lt.s32.totalorder %s3598_s28, 3 }
  0x12   : > { %s3601_s16 = smov [#allocation9]   ;;  %s3602_s19 = smov [#allocation12]  }
  0x13   : > { %p3711_p3 = pnand %p2084_p0, %p341_p2  ;;  %s379_s17 = sshll.u32 %s3601_s16, 4  ;;  %s3724_s17 = int_to_ptr.vmem [resolvable:$true] %s379_s17 }
  0x14   : > { %s405_s20 = sshll.u32 %s3602_s19, 4  ;;  %s4117_s1 = sld [smem:[#allocation21_spill]]  ;;  %s3726_s20 = int_to_ptr.vmem [resolvable:$true] %s405_s20 }
  0x15   : > { %s4115_s15 = scalar_select %p3711_p3, 1, 0 }
  0x16   : > { %p3237_p5 = pneg %p3711_p3 }
  0x18   : > { %p3720_p6 = pnand %p3237_p5, %p4105_p1 }
  0x1a   : > { %s3322_s23 = scalar_lea.hbm %s4117_s1, 3072  ;;  %p3736_p8 = pneg %p3720_p6 }
  0x1b   : > { %p3323_p7 = scmp.ne.s32.totalorder %s4117_s1, %s3322_s23  ;;  %p3329_p11 = scmp.lt.u32.totalorder %s3322_s23, %s4117_s1 }
  0x1d   : > { %p3325_p9 = pnand %p3736_p8, %p3323_p7 }
  0x1f   : > { %p3326_p10 = pneg %p3325_p9 }
  0x21   : > { %p3331_p12 = pnand %p3329_p11, %p3326_p10 }
  0x23   : > { %3334 = shalt.err (!%p3331_p12)
}
  0x24   : > { %s3335_s21 = scalar_lea.vmem %s3709_s30, 3072  ;;  %p3343_p5 = scmp.lt.s32.totalorder %s3709_s30, %s3709_s30 }
  0x25   : > { %p3336_p13 = scmp.ne.s32.totalorder %s3709_s30, %s3335_s21  ;;  %p3344_p4 = scmp.lt.s32.totalorder %s3335_s21, %s3335_s21 }
  0x27   : > { %p3338_p0 = pnand %p3336_p13, %p3736_p8  ;;  %p3345_p7 = por %p3344_p4, %p3343_p5 }
  0x29   : > { %p3339_p2 = pneg %p3338_p0 }
  0x2b   : > { %p3346_p9 = pnand %p3345_p7, %p3339_p2 }
  0x2d   : > { %3349 = shalt.err (!%p3346_p9)
}
  0x2e   : > { %s4107_s22 = smov 128   ;;  %s3604_s13 = smov 8  }
  0x2f   : > { %3240 = dma.hbm_to_vmem [thread:$0]  (!%p3720_p6), %s4117_s1, 3072, %s3709_s30, [#allocation7], %s4107_s22, %s4107_s22, %s3604_s13  }
  0x30   : > { %s3350_s21 = scalar_lea.hbm %s4093_s3, 6144 }
  0x31   : > { %p3351_p4 = scmp.ne.s32.totalorder %s4093_s3, %s3350_s21  ;;  %p3357_p12 = scmp.lt.u32.totalorder %s3350_s21, %s4093_s3 }
  0x33   : > { %p3353_p10 = pnand %p3351_p4, %p3736_p8 }
  0x35   : > { %p3354_p11 = pneg %p3353_p10 }
  0x37   : > { %p3359_p13 = pnand %p3357_p12, %p3354_p11 }
  0x39   : > { %3362 = shalt.err (!%p3359_p13)
}
  0x3a   : > { %s3363_s30 = scalar_lea.vmem %s3724_s17, 6144  ;;  %p3371_p7 = scmp.lt.s32.totalorder %s3724_s17, %s3724_s17 }
  0x3b   : > { %p3364_p0 = scmp.ne.s32.totalorder %s3724_s17, %s3363_s30  ;;  %p3372_p9 = scmp.lt.s32.totalorder %s3363_s30, %s3363_s30 }
  0x3d   : > { %p3366_p2 = pnand %p3364_p0, %p3736_p8  ;;  %p3373_p4 = por %p3372_p9, %p3371_p7 }
  0x3f   : > { %p3367_p5 = pneg %p3366_p2 }
  0x41   : > { %p3374_p10 = pnand %p3373_p4, %p3367_p5 }
  0x43   : > { %3377 = shalt.err (!%p3374_p10)
}
  0x44   : > { %3246 = dma.hbm_to_vmem [thread:$0]  (!%p3720_p6), %s4093_s3, 6144, %s3724_s17, [#allocation10], %s4107_s22, %s4107_s22, %s3604_s13  }
  0x45   : > { %s3378_s23 = scalar_lea.hbm %s4095_s5, 6144 }
  0x46   : > { %p3379_p11 = scmp.ne.s32.totalorder %s4095_s5, %s3378_s23  ;;  %p3385_p0 = scmp.lt.u32.totalorder %s3378_s23, %s4095_s5 }
  0x48   : > { %p3381_p12 = pnand %p3379_p11, %p3736_p8 }
  0x4a   : > { %p3382_p13 = pneg %p3381_p12 }
  0x4c   : > { %p3387_p2 = pnand %p3385_p0, %p3382_p13 }
  0x4e   : > { %3390 = shalt.err (!%p3387_p2)
}
  0x4f   : > { %s3391_s17 = scalar_lea.vmem %s3726_s20, 6144  ;;  %p3399_p4 = scmp.lt.s32.totalorder %s3726_s20, %s3726_s20 }
  0x50   : > { %p3392_p5 = scmp.ne.s32.totalorder %s3726_s20, %s3391_s17  ;;  %p3400_p10 = scmp.lt.s32.totalorder %s3391_s17, %s3391_s17 }
  0x52   : > { %p3394_p7 = pnand %p3392_p5, %p3736_p8  ;;  %p3401_p11 = por %p3400_p10, %p3399_p4 }
  0x54   : > { %p3395_p9 = pneg %p3394_p7 }
  0x56   : > { %p3402_p12 = pnand %p3401_p11, %p3395_p9 }
  0x58   : > { %3405 = shalt.err (!%p3402_p12)
}
  0x59   : > { %3252 = dma.hbm_to_vmem [thread:$0]  (!%p3720_p6), %s4095_s5, 6144, %s3726_s20, [#allocation13], %s4107_s22, %s4107_s22, %s3604_s13  }
  0x5a   : > { %s3605_s10 = smov [#allocation8]   ;;  %s3606_s12 = smov [#allocation11]  }
  0x5b   : > { %s366_s11 = sshll.u32 %s3605_s10, 4  ;;  %s392_s23 = sshll.u32 %s3606_s12, 4  ;;  %s367_s11 = int_to_ptr.vmem [resolvable:$true] %s366_s11  ;;  %s393_s23 = int_to_ptr.vmem [resolvable:$true] %s392_s23 }
  0x5c   : > { %s3406_s19 = scalar_lea.hbm %s4092_s2, 6144 }
  0x5d   : > { %p3407_p13 = scmp.ne.s32.totalorder %s4092_s2, %s3406_s19  ;;  %p3413_p5 = scmp.lt.u32.totalorder %s3406_s19, %s4092_s2 }
  0x5f   : > { %p3409_p0 = pnand %p3407_p13, %p3736_p8 }
  0x61   : > { %p3410_p2 = pneg %p3409_p0 }
  0x63   : > { %p3415_p7 = pnand %p3413_p5, %p3410_p2 }
  0x65   : > { %3418 = shalt.err (!%p3415_p7)
}
  0x66   : > { %s3419_s20 = scalar_lea.vmem %s367_s11, 6144  ;;  %p3427_p11 = scmp.lt.s32.totalorder %s367_s11, %s367_s11 }
  0x67   : > { %p3420_p9 = scmp.ne.s32.totalorder %s367_s11, %s3419_s20  ;;  %p3428_p12 = scmp.lt.s32.totalorder %s3419_s20, %s3419_s20 }
  0x69   : > { %p3422_p4 = pnand %p3420_p9, %p3736_p8  ;;  %p3429_p1 = por %p3428_p12, %p3427_p11 }
  0x6b   : > { %p3423_p10 = pneg %p3422_p4 }
  0x6d   : > { %p3430_p3 = pnand %p3429_p1, %p3423_p10 }
  0x6f   : > { %3433 = shalt.err (!%p3430_p3)
}
  0x70   : > { %3243 = dma.hbm_to_vmem [thread:$0]  (!%p3720_p6), %s4092_s2, 6144, %s367_s11, [#allocation7], %s4107_s22, %s4107_s22, %s3604_s13  }
  0x71   : > { %s3434_s24 = scalar_lea.hbm %s4094_s4, 6144 }
  0x72   : > { %p3435_p1 = scmp.ne.s32.totalorder %s4094_s4, %s3434_s24  ;;  %p3441_p0 = scmp.lt.u32.totalorder %s3434_s24, %s4094_s4 }
  0x74   : > { %p3437_p3 = pnand %p3435_p1, %p3736_p8 }
  0x76   : > { %p3438_p13 = pneg %p3437_p3 }
  0x78   : > { %p3443_p2 = pnand %p3441_p0, %p3438_p13 }
  0x7a   : > { %3446 = shalt.err (!%p3443_p2)
}
  0x7b   : > { %s3447_s30 = scalar_lea.vmem %s393_s23, 6144  ;;  %p3455_p4 = scmp.lt.s32.totalorder %s393_s23, %s393_s23 }
  0x7c   : > { %p3448_p5 = scmp.ne.s32.totalorder %s393_s23, %s3447_s30  ;;  %p3456_p10 = scmp.lt.s32.totalorder %s3447_s30, %s3447_s30 }
  0x7e   : > { %p3450_p7 = pnand %p3448_p5, %p3736_p8  ;;  %p3457_p11 = por %p3456_p10, %p3455_p4 }
  0x80   : > { %p3451_p9 = pneg %p3450_p7 }
  0x82   : > { %p3458_p12 = pnand %p3457_p11, %p3451_p9 }
  0x84   : > { %3461 = shalt.err (!%p3458_p12)
}
  0x85   : > { %3249 = dma.hbm_to_vmem [thread:$0]  (!%p3720_p6), %s4094_s4, 6144, %s393_s23, [#allocation10], %s4107_s22, %s4107_s22, %s3604_s13  }
  0x86   : > { %s3607_s1 = smov [#allocation14]   ;;  %s3462_s24 = scalar_lea.hbm %s4096_s6, 6144 }
  0x87   : > { %s418_s9 = sshll.u32 %s3607_s1, 4  ;;  %p3463_p1 = scmp.ne.s32.totalorder %s4096_s6, %s3462_s24  ;;  %s419_s9 = int_to_ptr.vmem [resolvable:$true] %s418_s9 }
  0x88   : > { %p3469_p0 = scmp.lt.u32.totalorder %s3462_s24, %s4096_s6 }
  0x89   : > { %p3465_p3 = pnand %p3463_p1, %p3736_p8 }
  0x8b   : > { %p3466_p13 = pneg %p3465_p3 }
  0x8d   : > { %p3471_p2 = pnand %p3469_p0, %p3466_p13 }
  0x8f   : > { %3474 = shalt.err (!%p3471_p2)
}
  0x90   : > { %s3475_s23 = scalar_lea.vmem %s419_s9, 6144  ;;  %p3483_p4 = scmp.lt.s32.totalorder %s419_s9, %s419_s9 }
  0x91   : > { %p3476_p5 = scmp.ne.s32.totalorder %s419_s9, %s3475_s23  ;;  %p3484_p10 = scmp.lt.s32.totalorder %s3475_s23, %s3475_s23 }
  0x93   : > { %p3478_p7 = pnand %p3476_p5, %p3736_p8  ;;  %p3485_p11 = por %p3484_p10, %p3483_p4 }
  0x95   : > { %p3479_p9 = pneg %p3478_p7 }
  0x97   : > { %p3486_p12 = pnand %p3485_p11, %p3479_p9 }
  0x99   : > { %3489 = shalt.err (!%p3486_p12)
}
  0x9a   : > { %3255 = dma.hbm_to_vmem [thread:$0]  (!%p3720_p6), %s4096_s6, 6144, %s419_s9, [#allocation13], %s4107_s22, %s4107_s22, %s3604_s13  }
  0x9b   : > { %s2083_s18 = sadd.s32 4294967294, %s3598_s28   ;;  %s3877_s16 = sadd.s32 1, %s3598_s28  }
  0x9c   : > { %s36_s20 = ssub.s32 %s3598_s28, %s3877_s16  ;;  %s39_s1 = sadd.s32 1, %s3594_s27 }
  0x9d   : > { %p37_p8 = scmp.eq.s32.totalorder %s36_s20, 0  ;;  %p46_p1 = scmp.ne.s32.totalorder %s3594_s27, %s3590_s26 }
  0x9e   : > { %p47_p3 = scmp.eq.s32.totalorder %s3598_s28, 0  ;;  %p52_p13 = scmp.ne.s32.totalorder %s3590_s26, %s3586_s25 }
  0x9f   : > { %s3888_s10 = scalar_select %p37_p8, %s3594_s27, %s39_s1  }
  0xa0   : > { %p3890_p0 = por %p47_p3, %p46_p1  ;;  %p4120_p2 = scmp.eq.s32.totalorder %s3704_s14, 0 }
  0xa1   : > { %p328_p5 = scmp.eq.s32.totalorder %s3704_s14, 1  ;;  %p334_p7 = scmp.eq.s32.totalorder %s2083_s18, 1 }
  0xa2   : > { %p3896_p6 = por %p4120_p2, %p52_p13  ;;  %p3270_p9 = scmp.lt.s32.totalorder %s3598_s28, 2 }
  0xa3   : > { %s450_s24 = sand.u32 1, %s3594_s27   ;;  %p3903_p4 = por %p328_p5, %p46_p1 }
  0xa4   : > { %p3907_p10 = por %p334_p7, %p52_p13  ;;  %s2092_s21 = sshll.u32 %s450_s24, 4 }
  0xa5   : > { %s4122_s29 = scalar_select %p3903_p4, 1, 0 }
  0xa6   : > { %s4123_s19 = scalar_select %p3907_p10, 1, 0 }
  0xa7   : > { %s2121_s17 = sshll.u32 %s3598_s28, 8  ;;  %s454_s18 = scalar_lea.vmem [#allocation3], %s2092_s21 }
  0xa8   : > { %s3915_s11 = scalar_lea.hbm %s4090_s0, %s2121_s17  ;;  %s461_s20 = sshll.u32 %s454_s18, 4  ;;  %s3917_s20 = int_to_ptr.vmem [resolvable:$true] %s461_s20 }
  0xa9   : > { %p3921_p11 = pnand %p3270_p9, %p3890_p0  ;;  %s3925_s22 = scalar_lea.sflag [#allocation4], %s450_s24 }
  0xaa   : > { %s3490_s23 = scalar_lea.hbm %s3915_s11, 256  ;;  %s3495_s12 = scalar_lea.hbm %s4090_s0, 512 }
  0xab   : > { %p3491_p12 = scmp.ne.s32.totalorder %s3915_s11, %s3490_s23  ;;  %p3492_p8 = pneg %p3921_p11 }
  0xac   : > { %p3496_p13 = scmp.lt.u32.totalorder %s3915_s11, %s4090_s0  ;;  %p3497_p0 = scmp.lt.u32.totalorder %s3495_s12, %s3490_s23 }
  0xad   : > { %p3493_p1 = pnand %p3492_p8, %p3491_p12  ;;  %p3499_p5 = scmp.lt.u32.totalorder %s3490_s23, %s3915_s11 }
  0xae   : > { %p3498_p2 = por %p3497_p0, %p3496_p13 }
  0xaf   : > { %p3494_p3 = pneg %p3493_p1 }
  0xb0   : > { %p3500_p7 = por %p3499_p5, %p3498_p2 }
  0xb2   : > { %p3501_p9 = pnand %p3500_p7, %p3494_p3 }
  0xb4   : > { %3504 = shalt.err (!%p3501_p9)
}
  0xb5   : > { %s3505_s24 = scalar_lea.vmem %s3917_s20, 256  ;;  %s3608_s21 = smov [#allocation3]  }
  0xb6   : > { %p3506_p12 = scmp.ne.s32.totalorder %s3917_s20, %s3505_s24  ;;  %s3510_s17 = sshll.u32 %s3608_s21, 4  ;;  %s3511_s17 = int_to_ptr.vmem [resolvable:$false] %s3510_s17 }
  0xb7   : > { %s3512_s30 = scalar_lea.vmem %s3511_s17, 512  ;;  %p3513_p4 = scmp.lt.s32.totalorder %s3917_s20, %s3511_s17 }
  0xb8   : > { %p3508_p1 = pnand %p3506_p12, %p3492_p8  ;;  %p3514_p13 = scmp.lt.s32.totalorder %s3512_s30, %s3505_s24 }
  0xba   : > { %p3509_p10 = pneg %p3508_p1  ;;  %p3515_p0 = por %p3514_p13, %p3513_p4 }
  0xbc   : > { %p3516_p2 = pnand %p3515_p0, %p3509_p10 }
  0xbe   : > { %3519 = shalt.err (!%p3516_p2)
}
  0xbf   : > { %s4125_s23 = smov 128   ;;  %p4126_p8 = scmp.ne.s32.totalorder %s4115_s15, 0 }
  0xc0   : > { %3259 = dma.hbm_to_vmem [thread:$0]  (!%p3921_p11), %s3915_s11, 256, %s3917_s20, %s3925_s22, %s4125_s23, %s4125_s23, %s3604_s13  }
  0xc1   : > { %473 = sbr.rel (%p4126_p8) target bundleno = 1778 (0x6f2), region = 72  ;;  %s3959_s12 = sand.u32 (!%p4126_p8), 1, %s3590_s26  }
  0xc2   : > { %s2096_s18 = sshll.u32 (!%p4126_p8), %s3959_s12, 4  ;;  %s476_s24 = scalar_lea.sflag (!%p4126_p8), [#allocation4], %s3959_s12 }
  0xc3   : > { %s479_s1 = scalar_lea.vmem (!%p4126_p8), [#allocation3], %s2096_s18 }
  0xc8   : > { %3565 = dma.done.wait (%p3896_p6), %s476_s24, 256  }
  0xc9   : > { %3567 = vsyncadd (%p3896_p6), %s476_s24, 4294967040  ;;  %p4127_p4 = scmp.eq.s32.totalorder %s3704_s14, 0 }
  0xcb   : > { %3569 = dma.done.wait (%p4127_p4), [#allocation7], 9216   ;;  %p4128_p10 = pmov %p4127_p4 }
  0xcc   : > { %p4129_p11 = pmov %p4127_p4 }
  0xcd   : > { %3571 = vsyncadd (%p4128_p10), [#allocation7], 4294958080 }
  0xce   : > { %3573 = dma.done.wait (%p4129_p11), [#allocation10], 12288   ;;  %p4130_p3 = pmov %p4127_p4 }
  0xd0   : > { %3575 = vsyncadd (%p4130_p3), [#allocation10], 4294955008  ;;  %p4131_p5 = pmov %p4130_p3 }
  0xd1   : > { %p4132_p7 = pmov %p4130_p3 }
  0xd2   : > { %3577 = dma.done.wait (%p4131_p5), [#allocation13], 12288  }
  0xd3   : > { %3579 = vsyncadd (%p4132_p7), [#allocation13], 4294955008  ;;  %v3609_v0 = vmov 0.0   ;;  %v566_v1 = vld [vmem:[#allocation6 + $0x40] sm:$0xff]  ;;  %v567_v2 = vld [vmem:[#allocation6 + $0x48] sm:$0xff]  ;;  %vm552_vm0 = vcmask 523264  }
  0xd4   : > { %546 = vst [vmem:[#allocation2] sm:$0xff] %v3609_v0  ;;  %547 = vst [vmem:[#allocation2 + $0x8] sm:$0xff] %v3609_v0  ;;  %v568_v3 = vld [vmem:[#allocation6 + $0x50] sm:$0xff]  ;;  %v2793_v4 = vpack.c.bf16 %v567_v2, %v566_v1  ;;  %v569_v5 = vld [vmem:[#allocation6 + $0x58] sm:$0xff]  ;;  %s4133_s21 = sld [smem:[#allocation22_spill]]  ;;  %s4134_s23 = sld [smem:[#allocation23_spill]] }
  0xd5   : > { %549 = vst [vmem:[#allocation2 + $0x18] sm:$0xff] %v3609_v0  ;;  %548 = vst [vmem:[#allocation2 + $0x10] sm:$0xff] %v3609_v0  ;;  %v2797_v6 = vpack.c.bf16 %v569_v5, %v568_v3  ;;  %v570_v7 = vld [vmem:[#allocation6 + $0x60] sm:$0xff]  ;;  %v571_v8 = vld [vmem:[#allocation6 + $0x68] sm:$0xff]  ;;  %s4135_s15 = sld [smem:[#allocation24_spill]]  ;;  %s4136_s9 = sld [smem:[#allocation25_spill]] }
  0xd6   : > { %v550_v9 = vld [vmem:[%s479_s1] sm:$0xff]  ;;  %2794 = vmatprep.subr.bf16.mxu0 %v2793_v4  ;;  %v551_v10 = vld [vmem:[%s479_s1 + $0x8] sm:$0xff]  ;;  %v2801_v11 = vpack.c.bf16 %v571_v8, %v570_v7  ;;  %s545_s11 = scalar_lea.vmem [#allocation15], %s2096_s18  ;;  %s1940_s18 = scalar_lea.sflag [#allocation5], %s3959_s12 }
  0xd7   : > { %553 = vst.msk [vmem:[#allocation2 + $0x8] sm:$0xff] %vm552_vm0, %v550_v9  ;;  %2367 = vmatprep.mubr.msk.f32.mxu0 %vm552_vm0, %v550_v9  ;;  %2796 = vmatpush3.bf16.msra.mxu0 %v2793_v4  ;;  %554 = vst.msk [vmem:[#allocation2 + $0x10] sm:$0xff] %vm552_vm0, %v551_v10  ;;  %v572_v12 = vld [vmem:[#allocation6 + $0x70] sm:$0xff]  ;;  %v573_v13 = vld [vmem:[#allocation6 + $0x78] sm:$0xff]  ;;  %s1953_s20 = sshll.u32 %s545_s11, 4  ;;  %p4138_p9 = scmp.ne.s32.totalorder %s4122_s29, 0  ;;  %s4041_s20 = int_to_ptr.vmem [resolvable:$true] %s1953_s20 }
  0xd8   : > { %2798 = vmatprep.subr.bf16.mxu0 %v2797_v6  ;;  %v864_v14 = vld [vmem:[#allocation8 + $0x80] sm:$0xff]  ;;  %v2805_v15 = vpack.c.bf16 %v573_v13, %v572_v12  ;;  %v865_v16 = vld [vmem:[#allocation8 + $0x88] sm:$0xff]  ;;  %v866_v17 = vld [vmem:[#allocation8 + $0x90] sm:$0xff]  ;;  %s3520_s1 = scalar_lea.vmem %s4041_s20, 256 }
  0xd9   : > { %v867_v18 = vld [vmem:[#allocation8 + $0x98] sm:$0xff]  ;;  %v557_v19 = vld [vmem:[#allocation6] sm:$0xff]  ;;  %v558_v20 = vld [vmem:[#allocation6 + $0x8] sm:$0xff]  ;;  %v2841_v21 = vpack.c.bf16 %v865_v16, %v864_v14  ;;  %p3521_p6 = scmp.ne.s32.totalorder %s4041_s20, %s3520_s1 }
  0xda   : > { %v2845_v22 = vpack.c.bf16 %v867_v18, %v866_v17  ;;  %v868_v23 = vld [vmem:[#allocation8 + $0xa0] sm:$0xff]  ;;  %v869_v24 = vld [vmem:[#allocation8 + $0xa8] sm:$0xff]  ;;  %v2809_v25 = vpack.c.bf16 %v558_v20, %v557_v19  ;;  %v559_v26 = vld [vmem:[#allocation6 + $0x10] sm:$0xff] }
  0xdb   : > { %2800 = vmatpush3.bf16.msra.mxu0 %v2797_v6  ;;  %2842 = vmatprep.subr.bf16.mxu1 %v2841_v21  ;;  %v560_v27 = vld [vmem:[#allocation6 + $0x18] sm:$0xff]  ;;  %v2849_v28 = vpack.c.bf16 %v869_v24, %v868_v23  ;;  %v870_v29 = vld [vmem:[#allocation8 + $0xb0] sm:$0xff]  ;;  %v561_v33 = vld [vmem:[#allocation6 + $0x20] sm:$0xff]  ;;  %p3522_p12 = pnand %p3521_p6, %p4138_p9 }
  0xdc   : > { %2802 = vmatprep.subr.bf16.mxu0 %v2801_v11  ;;  %2844 = vmatpush3.bf16.msra.mxu1 %v2841_v21  ;;  %v871_v30 = vld [vmem:[#allocation8 + $0xb8] sm:$0xff]  ;;  %v2813_v31 = vpack.c.bf16 %v560_v27, %v559_v26  ;;  %v562_v34 = vld [vmem:[#allocation6 + $0x28] sm:$0xff]  ;;  %v872_v36 = vld [vmem:[#allocation8 + $0xc0] sm:$0xff] }
  0xdd   : > { %2846 = vmatprep.subr.bf16.mxu1 %v2845_v22  ;;  %v2853_v35 = vpack.c.bf16 %v871_v30, %v870_v29  ;;  %v873_v37 = vld [vmem:[#allocation8 + $0xc8] sm:$0xff]  ;;  %v2817_v38 = vpack.c.bf16 %v562_v34, %v561_v33  ;;  %v563_v39 = vld [vmem:[#allocation6 + $0x30] sm:$0xff]  ;;  %v564_v40 = vld [vmem:[#allocation6 + $0x38] sm:$0xff]  ;;  %p3523_p1 = pneg %p3522_p12 }
  0xde   : > { %v555_v32 = vld [vmem:[#allocation2 + $0x7] sm:$0xff]  ;;  %v2857_v41 = vpack.c.bf16 %v873_v37, %v872_v36  ;;  %v874_v42 = vld [vmem:[#allocation8 + $0xd0] sm:$0xff]  ;;  %v875_v43 = vld [vmem:[#allocation8 + $0xd8] sm:$0xff]  ;;  %v2821_v44 = vpack.c.bf16 %v564_v40, %v563_v39 }
  0xdf   : > { %2804 = vmatpush3.bf16.msra.mxu0 %v2801_v11  ;;  %v739_v45 = vld [vmem:[#allocation6 + $0x80] sm:$0xff]  ;;  %v740_v46 = vld [vmem:[#allocation6 + $0x88] sm:$0xff]  ;;  %v2861_v47 = vpack.c.bf16 %v875_v43, %v874_v42  ;;  %v741_v51 = vld [vmem:[#allocation6 + $0x90] sm:$0xff] }
  0xe0   : > { %2806 = vmatprep.subr.bf16.mxu0 %v2805_v15  ;;  %2848 = vmatpush3.bf16.msra.mxu1 %v2845_v22  ;;  %v876_v48 = vld [vmem:[#allocation8 + $0xe0] sm:$0xff]  ;;  %v877_v49 = vld [vmem:[#allocation8 + $0xe8] sm:$0xff]  ;;  %v2825_v50 = vpack.c.bf16 %v740_v46, %v739_v45  ;;  %v742_v52 = vld [vmem:[#allocation6 + $0x98] sm:$0xff] }
  0xe1   : > { %2850 = vmatprep.subr.bf16.mxu1 %v2849_v28  ;;  %v2865_v53 = vpack.c.bf16 %v877_v49, %v876_v48  ;;  %v556_v54 = vld [vmem:[#allocation2 + $0xf] sm:$0xff]  ;;  %v2829_v55 = vpack.c.bf16 %v742_v52, %v741_v51  ;;  %v743_v57 = vld [vmem:[#allocation6 + $0xa0] sm:$0xff]  ;;  %v746_v61 = vld [vmem:[#allocation6 + $0xb8] sm:$0xff] }
  0xe2   : > { %v736_v56 = vld [vmem:[#allocation2 + $0x9] sm:$0xff]  ;;  %v737_v63 = vld [vmem:[#allocation2 + $0x11] sm:$0xff]  ;;  %v847_v4 = vld [vmem:[#allocation8] sm:$0xff] }
  0xe3   : > { %2808 = vmatpush3.bf16.msra.mxu0 %v2805_v15  ;;  %v744_v58 = vld [vmem:[#allocation6 + $0xa8] sm:$0xff]  ;;  %v745_v60 = vld [vmem:[#allocation6 + $0xb0] sm:$0xff]  ;;  %v879_v2 = vld [vmem:[#allocation8 + $0xf8] sm:$0xff] }
  0xe4   : > { %2810 = vmatprep.subr.bf16.mxu0 %v2809_v25  ;;  %2852 = vmatpush3.bf16.msra.mxu1 %v2849_v28  ;;  %v2833_v59 = vpack.c.bf16 %v744_v58, %v743_v57  ;;  %v2837_v62 = vpack.c.bf16 %v746_v61, %v745_v60  ;;  %v878_v1 = vld [vmem:[#allocation8 + $0xf0] sm:$0xff]  ;;  %v848_v5 = vld [vmem:[#allocation8 + $0x8] sm:$0xff]  ;;  %v1160_v7 = vld [vmem:[#allocation9 + $0x80] sm:$0xff] }
  0xe5   : > { %2854 = vmatprep.subr.bf16.mxu1 %v2853_v35  ;;  %v2869_v3 = vpack.c.bf16 %v879_v2, %v878_v1  ;;  %v2873_v6 = vpack.c.bf16 %v848_v5, %v847_v4  ;;  %v1161_v8 = vld [vmem:[#allocation9 + $0x88] sm:$0xff]  ;;  %v1162_v9 = vld [vmem:[#allocation9 + $0x90] sm:$0xff]  ;;  %v1163_v11 = vld [vmem:[#allocation9 + $0x98] sm:$0xff] }
  0xe6   : > { %2368 = vmatmul.mubr.msk.f32.vlgmr.msra.gmra.mrb[0].mxu0 %vm552_vm0, %v551_v10  ;;  %v2937_v10 = vpack.c.bf16 %v1161_v8, %v1160_v7  ;;  %v2941_v12 = vpack.c.bf16 %v1163_v11, %v1162_v9  ;;  %v1164_v13 = vld [vmem:[#allocation9 + $0xa0] sm:$0xff]  ;;  %v1165_v14 = vld [vmem:[#allocation9 + $0xa8] sm:$0xff]  ;;  %v1166_v16 = vld [vmem:[#allocation9 + $0xb0] sm:$0xff] }
  0xe7   : > { %2812 = vmatpush3.bf16.msra.mxu0 %v2809_v25  ;;  %2386 = vmatprep.mubr.msk.f32.mxu0 %vm552_vm0, %v555_v32  ;;  %v2945_v15 = vpack.c.bf16 %v1165_v14, %v1164_v13  ;;  %v1167_v17 = vld [vmem:[#allocation9 + $0xb8] sm:$0xff]  ;;  %v1168_v19 = vld [vmem:[#allocation9 + $0xc0] sm:$0xff]  ;;  %v1169_v20 = vld [vmem:[#allocation9 + $0xc8] sm:$0xff] }
  0xe8   : > { %2814 = vmatprep.subr.bf16.mxu0 %v2813_v31  ;;  %2856 = vmatpush3.bf16.msra.mxu1 %v2853_v35  ;;  %v2949_v18 = vpack.c.bf16 %v1167_v17, %v1166_v16  ;;  %v2953_v21 = vpack.c.bf16 %v1169_v20, %v1168_v19  ;;  %v1170_v22 = vld [vmem:[#allocation9 + $0xd0] sm:$0xff]  ;;  %v1171_v23 = vld [vmem:[#allocation9 + $0xd8] sm:$0xff]  ;;  %v1172_v25 = vld [vmem:[#allocation9 + $0xe0] sm:$0xff] }
  0xe9   : > { %2858 = vmatprep.subr.bf16.mxu1 %v2857_v41  ;;  %v2957_v24 = vpack.c.bf16 %v1171_v23, %v1170_v22  ;;  %v1173_v26 = vld [vmem:[#allocation9 + $0xe8] sm:$0xff]  ;;  %v2110_v28 = vld [vmem:[%s4097_s7] ss:$0 sm:$0xff]  ;;  %v849_v33 = vld [vmem:[#allocation8 + $0x10] sm:$0xff] }
  0xea   : > { %v2961_v27 = vpack.c.bf16 %v1173_v26, %v1172_v25  ;;  %v850_v34 = vld [vmem:[#allocation8 + $0x18] sm:$0xff]  ;;  %v852_v39 = vld [vmem:[#allocation8 + $0x28] sm:$0xff]  ;;  %v855_v45 = vld [vmem:[#allocation8 + $0x40] sm:$0xff] }
  0xeb   : > { %2816 = vmatpush3.bf16.msra.mxu0 %v2813_v31  ;;  %v2877_v37 = vpack.c.bf16 %v850_v34, %v849_v33  ;;  %v854_v42 = vld [vmem:[#allocation8 + $0x38] sm:$0xff]  ;;  %v856_v46 = vld [vmem:[#allocation8 + $0x48] sm:$0xff]  ;;  %v857_v48 = vld [vmem:[#allocation8 + $0x50] sm:$0xff] }
  0xec   : > { %2818 = vmatprep.subr.bf16.mxu0 %v2817_v38  ;;  %2860 = vmatpush3.bf16.msra.mxu1 %v2857_v41  ;;  %v853_v41 = vld [vmem:[#allocation8 + $0x30] sm:$0xff]  ;;  %v858_v49 = vld [vmem:[#allocation8 + $0x58] sm:$0xff]  ;;  %v859_v51 = vld [vmem:[#allocation8 + $0x60] sm:$0xff] }
  0xed   : > { %2862 = vmatprep.subr.bf16.mxu1 %v2861_v47  ;;  %v860_v52 = vld [vmem:[#allocation8 + $0x68] sm:$0xff]  ;;  %v1033_v57 = vld [vmem:[#allocation8 + $0x100] sm:$0xff]  ;;  %v1035_v60 = vld [vmem:[#allocation8 + $0x110] sm:$0xff] }
  0xee   : > { %v1034_v58 = vld [vmem:[#allocation8 + $0x108] sm:$0xff]  ;;  %v1036_v61 = vld [vmem:[#allocation8 + $0x118] sm:$0xff]  ;;  %v1037_v1 = vld [vmem:[#allocation8 + $0x120] sm:$0xff] }
  0xef   : > { %2820 = vmatpush3.bf16.msra.mxu0 %v2817_v38  ;;  %v851_v38 = vld [vmem:[#allocation8 + $0x20] sm:$0xff]  ;;  %v1038_v2 = vld [vmem:[#allocation8 + $0x128] sm:$0xff]  ;;  %v1039_v5 = vld [vmem:[#allocation8 + $0x130] sm:$0xff] }
  0xf0   : > { %2822 = vmatprep.subr.bf16.mxu0 %v2821_v44  ;;  %2864 = vmatpush3.bf16.msra.mxu1 %v2861_v47  ;;  %v2881_v40 = vpack.c.bf16 %v852_v39, %v851_v38  ;;  %v2889_v47 = vpack.c.bf16 %v856_v46, %v855_v45  ;;  %v2913_v4 = vpack.c.bf16 %v1038_v2, %v1037_v1  ;;  %v1041_v8 = vld [vmem:[#allocation8 + $0x140] sm:$0xff]  ;;  %v1042_v9 = vld [vmem:[#allocation8 + $0x148] sm:$0xff]  ;;  %v1043_v11 = vld [vmem:[#allocation8 + $0x150] sm:$0xff] }
  0xf1   : > { %2866 = vmatprep.subr.bf16.mxu1 %v2865_v53  ;;  %v1045_v14 = vld [vmem:[#allocation8 + $0x160] sm:$0xff]  ;;  %v1047_v17 = vld [vmem:[#allocation8 + $0x170] sm:$0xff]  ;;  %v1175_v22 = vld [vmem:[#allocation9 + $0xf8] sm:$0xff] }
  0xf2   : > { %v1144_v25 = vld [vmem:[#allocation9 + $0x8] sm:$0xff]  ;;  %v1460_v33 = vld [vmem:[#allocation11 + $0xa0] sm:$0xff]  ;;  %v1462_v38 = vld [vmem:[#allocation11 + $0xb0] sm:$0xff] }
  0xf3   : > { %2824 = vmatpush3.bf16.msra.mxu0 %v2821_v44  ;;  %v2885_v44 = vpack.c.bf16 %v854_v42, %v853_v41  ;;  %v1461_v34 = vld [vmem:[#allocation11 + $0xa8] sm:$0xff]  ;;  %v1463_v39 = vld [vmem:[#allocation11 + $0xb8] sm:$0xff]  ;;  %v1464_v41 = vld [vmem:[#allocation11 + $0xc0] sm:$0xff] }
  0xf4   : > { %2826 = vmatprep.subr.bf16.mxu0 %v2825_v50  ;;  %2868 = vmatpush3.bf16.msra.mxu1 %v2865_v53  ;;  %v2897_v53 = vpack.c.bf16 %v860_v52, %v859_v51  ;;  %v1465_v42 = vld [vmem:[#allocation11 + $0xc8] sm:$0xff]  ;;  %v1467_v45 = vld [vmem:[#allocation11 + $0xd8] sm:$0xff] }
  0xf5   : > { %2870 = vmatprep.subr.bf16.mxu1 %v2869_v3  ;;  %v1150_v1 = vld [vmem:[#allocation9 + $0x38] sm:$0xff] }
  0xf6   : > { %2387 = vmatmul.mubr.msk.f32.vlgmr.msra.gmra.mrb[0].mxu0 %vm552_vm0, %v556_v54  ;;  %v861_v54 = vld [vmem:[#allocation8 + $0x70] sm:$0xff] }
  0xf7   : > { %2828 = vmatpush3.bf16.msra.mxu0 %v2825_v50  ;;  %2405 = vmatprep.mubr.msk.f32.mxu0 %vm552_vm0, %v736_v56  ;;  %v2893_v50 = vpack.c.bf16 %v858_v49, %v857_v48  ;;  %v1469_v48 = vld [vmem:[#allocation11 + $0xe8] sm:$0xff] }
  0xf8   : > { %2830 = vmatprep.subr.bf16.mxu0 %v2829_v55  ;;  %2872 = vmatpush3.bf16.msra.mxu1 %v2869_v3 }
  0xf9   : > { %2874 = vmatprep.subr.bf16.mxu1 %v2873_v6 }
  0xfb   : > { %2832 = vmatpush3.bf16.msra.mxu0 %v2829_v55  ;;  %v862_v55 = vld [vmem:[#allocation8 + $0x78] sm:$0xff] }
  0xfc   : > { %2834 = vmatprep.subr.bf16.mxu0 %v2833_v59  ;;  %v2901_v56 = vpack.c.bf16 %v862_v55, %v861_v54  ;;  %v1145_v55 = vld [vmem:[#allocation9 + $0x10] sm:$0xff] }
  0xff   : > { %2836 = vmatpush3.bf16.msra.mxu0 %v2833_v59  ;;  %v2905_v59 = vpack.c.bf16 %v1034_v58, %v1033_v57 }
 0x100   : > { %2838 = vmatprep.subr.bf16.mxu0 %v2837_v62 }
 0x103   : > { %2840 = vmatpush3.bf16.msra.mxu0 %v2837_v62  ;;  %v2909_v62 = vpack.c.bf16 %v1036_v61, %v1035_v60  ;;  %v1147_v60 = vld [vmem:[#allocation9 + $0x20] sm:$0xff]  ;;  %v1148_v61 = vld [vmem:[#allocation9 + $0x28] sm:$0xff] }
 0x104   : > { %2938 = vmatprep.subr.bf16.mxu0 %v2937_v10 }
 0x106   : > { %2406 = vmatmul.mubr.msk.f32.vlgmr.msra.gmra.mrb[0].mxu0 %vm552_vm0, %v737_v63 }
 0x107   : > { %2940 = vmatpush3.bf16.msra.mxu0 %v2937_v10  ;;  %v2921_v10 = vpack.c.bf16 %v1042_v9, %v1041_v8  ;;  %v1154_v8 = vld [vmem:[#allocation9 + $0x58] sm:$0xff] }
 0x108   : > { %2942 = vmatprep.subr.bf16.mxu0 %v2941_v12 }
 0x10b   : > { %2944 = vmatpush3.bf16.msra.mxu0 %v2941_v12  ;;  %v1044_v12 = vld [vmem:[#allocation8 + $0x158] sm:$0xff] }
 0x10c   : > { %2946 = vmatprep.subr.bf16.mxu0 %v2945_v15  ;;  %v2925_v13 = vpack.c.bf16 %v1044_v12, %v1043_v11  ;;  %v1156_v11 = vld [vmem:[#allocation9 + $0x68] sm:$0xff] }
 0x10f   : > { %2948 = vmatpush3.bf16.msra.mxu0 %v2945_v15  ;;  %v1046_v15 = vld [vmem:[#allocation8 + $0x168] sm:$0xff] }
 0x110   : > { %2950 = vmatprep.subr.bf16.mxu0 %v2949_v18  ;;  %v2929_v16 = vpack.c.bf16 %v1046_v15, %v1045_v14  ;;  %v1158_v14 = vld [vmem:[#allocation9 + $0x78] sm:$0xff] }
 0x113   : > { %2952 = vmatpush3.bf16.msra.mxu0 %v2949_v18  ;;  %v1048_v18 = vld [vmem:[#allocation8 + $0x178] sm:$0xff] }
 0x114   : > { %2954 = vmatprep.subr.bf16.mxu0 %v2953_v21  ;;  %v2933_v19 = vpack.c.bf16 %v1048_v18, %v1047_v17  ;;  %v1330_v17 = vld [vmem:[#allocation9 + $0x108] sm:$0xff] }
 0x117   : > { %2956 = vmatpush3.bf16.msra.mxu0 %v2953_v21  ;;  %v1174_v21 = vld [vmem:[#allocation9 + $0xf0] sm:$0xff] }
 0x118   : > { %2958 = vmatprep.subr.bf16.mxu0 %v2957_v24  ;;  %v2965_v23 = vpack.c.bf16 %v1175_v22, %v1174_v21 }
 0x11b   : > { %2960 = vmatpush3.bf16.msra.mxu0 %v2957_v24  ;;  %v1143_v24 = vld [vmem:[#allocation9] sm:$0xff] }
 0x11c   : > { %2962 = vmatprep.subr.bf16.mxu0 %v2961_v27  ;;  %v2969_v26 = vpack.c.bf16 %v1144_v25, %v1143_v24  ;;  %v1334_v24 = vld [vmem:[#allocation9 + $0x128] sm:$0xff] }
 0x11f   : > { %2964 = vmatpush3.bf16.msra.mxu0 %v2961_v27  ;;  %v1456_v27 = vld [vmem:[#allocation11 + $0x80] sm:$0xff] }
 0x120   : > { %2966 = vmatprep.subr.bf16.mxu0 %v2965_v23 }
 0x123   : > { %2968 = vmatpush3.bf16.msra.mxu0 %v2965_v23  ;;  %v1333_v23 = vld [vmem:[#allocation9 + $0x120] sm:$0xff] }
 0x124   : > { %2970 = vmatprep.subr.bf16.mxu0 %v2969_v26  ;;  %v3009_v25 = vpack.c.bf16 %v1334_v24, %v1333_v23  ;;  %v1443_v23 = vld [vmem:[#allocation11 + $0x20] sm:$0xff]  ;;  %v1444_v24 = vld [vmem:[#allocation11 + $0x28] sm:$0xff] }
 0x1d9   : > { %v2407_v29 = vpop.f32.mrb[0].mxu0 }
 0x1da   : > { %v838_v30 = vadd.f32 %v2407_v29, %v2110_v28  ;;  %v819_v31 = vpop.f32.mrb[1].mxu0  ;;  %v1458_v29 = vld [vmem:[#allocation11 + $0x90] sm:$0xff] }
 0x1db   : > { %v837_v32 = vadd.f32 %v2110_v28, %v819_v31  ;;  %v1457_v28 = vld [vmem:[#allocation11 + $0x88] sm:$0xff]  ;;  %v1459_v31 = vld [vmem:[#allocation11 + $0x98] sm:$0xff] }
 0x1dc   : > { %v3996_v35 = vmax.f32 %v838_v30, 0.0  ;;  %v3033_v30 = vpack.c.bf16 %v1457_v28, %v1456_v27  ;;  %v1336_v27 = vld [vmem:[#allocation9 + $0x138] sm:$0xff] }
 0x1dd   : > { %v3998_v36 = vmax.f32 %v837_v32, 0.0  ;;  %v3037_v32 = vpack.c.bf16 %v1459_v31, %v1458_v29  ;;  %v1337_v29 = vld [vmem:[#allocation9 + $0x140] sm:$0xff] }
 0x1de   : > { %844 = vst [vmem:[#allocation2 + $0x10] sm:$0xff] %v3996_v35 }
 0x1df   : > { %843 = vst [vmem:[#allocation2 + $0x8] sm:$0xff] %v3998_v36  ;;  %2440 = vmatprep.mubr.f32.mxu1 %v3998_v36 }
 0x1e0   : > { %2441 = vmatmul.mubr.f32.vlgmr.msra.gmra.mrb[0].mxu1 %v3996_v35 }
 0x1e1   : > { %2876 = vmatpush3.bf16.msra.mxu1 %v2873_v6  ;;  %v1040_v6 = vld [vmem:[#allocation8 + $0x138] sm:$0xff] }
 0x1e2   : > { %2878 = vmatprep.subr.bf16.mxu1 %v2877_v37  ;;  %v2917_v7 = vpack.c.bf16 %v1040_v6, %v1039_v5  ;;  %v1152_v5 = vld [vmem:[#allocation9 + $0x48] sm:$0xff] }
 0x1e5   : > { %2880 = vmatpush3.bf16.msra.mxu1 %v2877_v37  ;;  %v1031_v20 = vld [vmem:[#allocation2 + $0x12] sm:$0xff]  ;;  %v3041_v37 = vpack.c.bf16 %v1461_v34, %v1460_v33 }
 0x1e6   : > { %2882 = vmatprep.subr.bf16.mxu1 %v2881_v40  ;;  %v845_v43 = vld [vmem:[#allocation2 + $0x6] sm:$0xff]  ;;  %v846_v63 = vld [vmem:[#allocation2 + $0xe] sm:$0xff]  ;;  %v1340_v33 = vld [vmem:[#allocation9 + $0x158] sm:$0xff] }
 0x1e7   : > { %2475 = vmatprep.mubr.f32.mxu1 %v845_v43  ;;  %v1030_v3 = vld [vmem:[#allocation2 + $0xa] sm:$0xff]  ;;  %v3049_v43 = vpack.c.bf16 %v1465_v42, %v1464_v41  ;;  %v1344_v41 = vld [vmem:[#allocation9 + $0x178] sm:$0xff] }
 0x1e9   : > { %2884 = vmatpush3.bf16.msra.mxu1 %v2881_v40  ;;  %v3045_v40 = vpack.c.bf16 %v1463_v39, %v1462_v38  ;;  %v1342_v38 = vld [vmem:[#allocation9 + $0x168] sm:$0xff] }
 0x1ea   : > { %2886 = vmatprep.subr.bf16.mxu1 %v2885_v44 }
 0x1ed   : > { %2888 = vmatpush3.bf16.msra.mxu1 %v2885_v44  ;;  %v1466_v44 = vld [vmem:[#allocation11 + $0xd0] sm:$0xff] }
 0x1ee   : > { %2890 = vmatprep.subr.bf16.mxu1 %v2889_v47  ;;  %v3053_v46 = vpack.c.bf16 %v1467_v45, %v1466_v44  ;;  %v1470_v44 = vld [vmem:[#allocation11 + $0xf0] sm:$0xff]  ;;  %v1471_v45 = vld [vmem:[#allocation11 + $0xf8] sm:$0xff] }
 0x1f1   : > { %2892 = vmatpush3.bf16.msra.mxu1 %v2889_v47  ;;  %v1468_v47 = vld [vmem:[#allocation11 + $0xe0] sm:$0xff] }
 0x1f2   : > { %2894 = vmatprep.subr.bf16.mxu1 %v2893_v50  ;;  %v3057_v49 = vpack.c.bf16 %v1469_v48, %v1468_v47  ;;  %v1439_v47 = vld [vmem:[#allocation11] sm:$0xff]  ;;  %v1440_v48 = vld [vmem:[#allocation11 + $0x8] sm:$0xff] }
 0x1f5   : > { %2896 = vmatpush3.bf16.msra.mxu1 %v2893_v50  ;;  %v2111_v50 = vld [vmem:[%s4098_s8] ss:$0 sm:$0xff] }
 0x1f6   : > { %2898 = vmatprep.subr.bf16.mxu1 %v2897_v53 }
 0x1f9   : > { %2900 = vmatpush3.bf16.msra.mxu1 %v2897_v53 }
 0x1fa   : > { %2902 = vmatprep.subr.bf16.mxu1 %v2901_v56 }
 0x1fd   : > { %2904 = vmatpush3.bf16.msra.mxu1 %v2901_v56  ;;  %v1146_v56 = vld [vmem:[#allocation9 + $0x18] sm:$0xff] }
 0x1fe   : > { %2906 = vmatprep.subr.bf16.mxu1 %v2905_v59 }
 0x200   : > { %2476 = vmatmul.mubr.f32.vlgmr.msra.gmra.mrb[0].mxu1 %v846_v63  ;;  %v1149_v63 = vld [vmem:[#allocation9 + $0x30] sm:$0xff] }
 0x201   : > { %2908 = vmatpush3.bf16.msra.mxu1 %v2905_v59  ;;  %2510 = vmatprep.mubr.f32.mxu1 %v1030_v3  ;;  %v2973_v59 = vpack.c.bf16 %v1146_v56, %v1145_v55  ;;  %v2981_v3 = vpack.c.bf16 %v1150_v1, %v1149_v63  ;;  %v1736_v56 = vld [vmem:[#allocation12 + $0xa0] sm:$0xff] }
 0x202   : > { %2910 = vmatprep.subr.bf16.mxu1 %v2909_v62  ;;  %v1740_v1 = vld [vmem:[#allocation12 + $0xc0] sm:$0xff] }
 0x205   : > { %2912 = vmatpush3.bf16.msra.mxu1 %v2909_v62  ;;  %v2977_v62 = vpack.c.bf16 %v1148_v61, %v1147_v60  ;;  %v1738_v61 = vld [vmem:[#allocation12 + $0xb0] sm:$0xff] }
 0x206   : > { %2914 = vmatprep.subr.bf16.mxu1 %v2913_v4 }
 0x209   : > { %2916 = vmatpush3.bf16.msra.mxu1 %v2913_v4  ;;  %v1151_v4 = vld [vmem:[#allocation9 + $0x40] sm:$0xff] }
 0x20a   : > { %2918 = vmatprep.subr.bf16.mxu1 %v2917_v7  ;;  %v2985_v6 = vpack.c.bf16 %v1152_v5, %v1151_v4  ;;  %v1742_v4 = vld [vmem:[#allocation12 + $0xd0] sm:$0xff]  ;;  %v1743_v5 = vld [vmem:[#allocation12 + $0xd8] sm:$0xff] }
 0x20d   : > { %2920 = vmatpush3.bf16.msra.mxu1 %v2917_v7  ;;  %v1153_v7 = vld [vmem:[#allocation9 + $0x50] sm:$0xff] }
 0x20e   : > { %2922 = vmatprep.subr.bf16.mxu1 %v2921_v10  ;;  %v2989_v9 = vpack.c.bf16 %v1154_v8, %v1153_v7  ;;  %v1744_v7 = vld [vmem:[#allocation12 + $0xe0] sm:$0xff]  ;;  %v1745_v8 = vld [vmem:[#allocation12 + $0xe8] sm:$0xff] }
 0x211   : > { %2924 = vmatpush3.bf16.msra.mxu1 %v2921_v10  ;;  %v1155_v10 = vld [vmem:[#allocation9 + $0x60] sm:$0xff] }
 0x212   : > { %2926 = vmatprep.subr.bf16.mxu1 %v2925_v13  ;;  %v2993_v12 = vpack.c.bf16 %v1156_v11, %v1155_v10  ;;  %v2112_v10 = vld [vmem:[%s4133_s21] ss:$0 sm:$0xff]  ;;  %s2122_s21 = sshll.u32 %s3704_s14, 8  ;;  %s3610_s14 = smov [#allocation15]  }
 0x215   : > { %2928 = vmatpush3.bf16.msra.mxu1 %v2925_v13  ;;  %v1157_v13 = vld [vmem:[#allocation9 + $0x70] sm:$0xff] }
 0x216   : > { %2930 = vmatprep.subr.bf16.mxu1 %v2929_v16  ;;  %v2997_v15 = vpack.c.bf16 %v1158_v14, %v1157_v13 }
 0x219   : > { %2932 = vmatpush3.bf16.msra.mxu1 %v2929_v16  ;;  %v1329_v16 = vld [vmem:[#allocation9 + $0x100] sm:$0xff] }
 0x21a   : > { %2934 = vmatprep.subr.bf16.mxu1 %v2933_v19  ;;  %v3001_v18 = vpack.c.bf16 %v1330_v17, %v1329_v16  ;;  %v1442_v16 = vld [vmem:[#allocation11 + $0x18] sm:$0xff] }
 0x21d   : > { %2936 = vmatpush3.bf16.msra.mxu1 %v2933_v19  ;;  %v1331_v19 = vld [vmem:[#allocation9 + $0x110] sm:$0xff] }
 0x21e   : > { %3034 = vmatprep.subr.bf16.mxu1 %v3033_v30 }
 0x220   : > { %2511 = vmatmul.mubr.f32.vlgmr.msra.gmra.mrb[0].mxu1 %v1031_v20  ;;  %v1332_v20 = vld [vmem:[#allocation9 + $0x118] sm:$0xff] }
 0x221   : > { %3036 = vmatpush3.bf16.msra.mxu1 %v3033_v30  ;;  %v3005_v21 = vpack.c.bf16 %v1332_v20, %v1331_v19  ;;  %v1338_v30 = vld [vmem:[#allocation9 + $0x148] sm:$0xff] }
 0x222   : > { %3038 = vmatprep.subr.bf16.mxu1 %v3037_v32  ;;  %v3017_v31 = vpack.c.bf16 %v1338_v30, %v1337_v29  ;;  %v1449_v29 = vld [vmem:[#allocation11 + $0x50] sm:$0xff]  ;;  %v1450_v30 = vld [vmem:[#allocation11 + $0x58] sm:$0xff] }
 0x225   : > { %3040 = vmatpush3.bf16.msra.mxu1 %v3037_v32  ;;  %v1339_v32 = vld [vmem:[#allocation9 + $0x150] sm:$0xff] }
 0x226   : > { %3042 = vmatprep.subr.bf16.mxu1 %v3041_v37  ;;  %v3021_v34 = vpack.c.bf16 %v1340_v33, %v1339_v32  ;;  %v1451_v32 = vld [vmem:[#allocation11 + $0x60] sm:$0xff]  ;;  %v1452_v33 = vld [vmem:[#allocation11 + $0x68] sm:$0xff] }
 0x229   : > { %3044 = vmatpush3.bf16.msra.mxu1 %v3041_v37  ;;  %v1341_v37 = vld [vmem:[#allocation9 + $0x160] sm:$0xff] }
 0x22a   : > { %3046 = vmatprep.subr.bf16.mxu1 %v3045_v40  ;;  %v3025_v39 = vpack.c.bf16 %v1342_v38, %v1341_v37  ;;  %v1454_v37 = vld [vmem:[#allocation11 + $0x78] sm:$0xff] }
 0x22d   : > { %3048 = vmatpush3.bf16.msra.mxu1 %v3045_v40  ;;  %v1343_v40 = vld [vmem:[#allocation9 + $0x170] sm:$0xff] }
 0x22e   : > { %3050 = vmatprep.subr.bf16.mxu1 %v3049_v43  ;;  %v3029_v42 = vpack.c.bf16 %v1344_v41, %v1343_v40  ;;  %v1626_v40 = vld [vmem:[#allocation11 + $0x108] sm:$0xff] }
 0x231   : > { %3052 = vmatpush3.bf16.msra.mxu1 %v3049_v43 }
 0x232   : > { %3054 = vmatprep.subr.bf16.mxu1 %v3053_v46 }
 0x235   : > { %3056 = vmatpush3.bf16.msra.mxu1 %v3053_v46  ;;  %v3061_v46 = vpack.c.bf16 %v1471_v45, %v1470_v44  ;;  %v1629_v45 = vld [vmem:[#allocation11 + $0x120] sm:$0xff] }
 0x236   : > { %3058 = vmatprep.subr.bf16.mxu1 %v3057_v49 }
 0x239   : > { %3060 = vmatpush3.bf16.msra.mxu1 %v3057_v49  ;;  %v3065_v49 = vpack.c.bf16 %v1440_v48, %v1439_v47  ;;  %v1631_v48 = vld [vmem:[#allocation11 + $0x130] sm:$0xff] }
 0x23a   : > { %3062 = vmatprep.subr.bf16.mxu1 %v3061_v46 }
 0x23d   : > { %3064 = vmatpush3.bf16.msra.mxu1 %v3061_v46  ;;  %v1630_v46 = vld [vmem:[#allocation11 + $0x128] sm:$0xff] }
 0x23e   : > { %3066 = vmatprep.subr.bf16.mxu1 %v3065_v49  ;;  %v3105_v47 = vpack.c.bf16 %v1630_v46, %v1629_v45  ;;  %v2115_v45 = vld [vmem:[%s4136_s9] ss:$0 sm:$0xff] }
 0x2f3   : > { %v2512_v51 = vpop.f32.mrb[0].mxu1 }
 0x2f4   : > { %v1134_v52 = vadd.f32 %v2512_v51, %v2111_v50  ;;  %v1115_v53 = vpop.f32.mrb[1].mxu1  ;;  %v1733_v51 = vld [vmem:[#allocation12 + $0x88] sm:$0xff] }
 0x2f5   : > { %v1133_v54 = vadd.f32 %v2111_v50, %v1115_v53  ;;  %v1732_v50 = vld [vmem:[#allocation12 + $0x80] sm:$0xff] }
 0x2f6   : > { %v4007_v57 = vmax.f32 %v1134_v52, 0.0  ;;  %v1734_v52 = vld [vmem:[#allocation12 + $0x90] sm:$0xff]  ;;  %v3129_v53 = vpack.c.bf16 %v1733_v51, %v1732_v50  ;;  %v1633_v51 = vld [vmem:[#allocation11 + $0x140] sm:$0xff] }
 0x2f7   : > { %v4009_v58 = vmax.f32 %v1133_v54, 0.0  ;;  %v1735_v54 = vld [vmem:[#allocation12 + $0x98] sm:$0xff] }
 0x2f8   : > { %1140 = vst [vmem:[#allocation2 + $0x10] sm:$0xff] %v4007_v57  ;;  %v3133_v55 = vpack.c.bf16 %v1735_v54, %v1734_v52  ;;  %v1138_v17 = vadd.f32 %v4007_v57, %v3996_v35  ;;  %v3073_v35 = vpack.c.bf16 %v1444_v24, %v1443_v23  ;;  %v1634_v52 = vld [vmem:[#allocation11 + $0x148] sm:$0xff]  ;;  %v1635_v54 = vld [vmem:[#allocation11 + $0x150] sm:$0xff] }
 0x2f9   : > { %1139 = vst [vmem:[#allocation2 + $0x8] sm:$0xff] %v4009_v58  ;;  %2545 = vmatprep.mubr.f32.mxu0 %v4009_v58  ;;  %v1137_v19 = vadd.f32 %v4009_v58, %v3998_v36  ;;  %v1447_v58 = vld [vmem:[#allocation11 + $0x40] sm:$0xff]  ;;  %v1840_v23 = vld [vmem:[#allocation14 + $0xa8] sm:$0xff] }
 0x2fa   : > { %2546 = vmatmul.mubr.f32.vlgmr.msra.gmra.mrb[2].mxu0 %v4007_v57  ;;  %v1445_v57 = vld [vmem:[#allocation11 + $0x30] sm:$0xff] }
 0x2fb   : > { %2972 = vmatpush3.bf16.msra.mxu0 %v2969_v26  ;;  %v1335_v26 = vld [vmem:[#allocation9 + $0x130] sm:$0xff] }
 0x2fc   : > { %2974 = vmatprep.subr.bf16.mxu0 %v2973_v59  ;;  %v3013_v28 = vpack.c.bf16 %v1336_v27, %v1335_v26  ;;  %v1446_v26 = vld [vmem:[#allocation11 + $0x38] sm:$0xff]  ;;  %v1448_v27 = vld [vmem:[#allocation11 + $0x48] sm:$0xff] }
 0x2fd   : > { %v3077_v36 = vpack.c.bf16 %v1446_v26, %v1445_v57  ;;  %v1842_v57 = vld [vmem:[#allocation14 + $0xb8] sm:$0xff] }
 0x2ff   : > { %2976 = vmatpush3.bf16.msra.mxu0 %v2973_v59  ;;  %v1327_v43 = vld [vmem:[#allocation2 + $0x14] sm:$0xff]  ;;  %v1737_v59 = vld [vmem:[#allocation12 + $0xa8] sm:$0xff] }
 0x300   : > { %2978 = vmatprep.subr.bf16.mxu0 %v2977_v62  ;;  %v1141_v2 = vld [vmem:[#allocation2 + $0x4] sm:$0xff]  ;;  %v1142_v22 = vld [vmem:[#allocation2 + $0xc] sm:$0xff]  ;;  %v3137_v60 = vpack.c.bf16 %v1737_v59, %v1736_v56 }
 0x301   : > { %2580 = vmatprep.mubr.f32.mxu0 %v1141_v2  ;;  %v1741_v2 = vld [vmem:[#allocation12 + $0xc8] sm:$0xff]  ;;  %v1637_v59 = vld [vmem:[#allocation11 + $0x160] sm:$0xff] }
 0x303   : > { %2980 = vmatpush3.bf16.msra.mxu0 %v2977_v62  ;;  %v1739_v62 = vld [vmem:[#allocation12 + $0xb8] sm:$0xff] }
 0x304   : > { %2982 = vmatprep.subr.bf16.mxu0 %v2981_v3  ;;  %v3141_v63 = vpack.c.bf16 %v1739_v62, %v1738_v61  ;;  %v1639_v62 = vld [vmem:[#allocation11 + $0x170] sm:$0xff] }
 0x307   : > { %2984 = vmatpush3.bf16.msra.mxu0 %v2981_v3  ;;  %v3145_v3 = vpack.c.bf16 %v1741_v2, %v1740_v1  ;;  %v3321_v2 = vld [vmem:[#allocation2] sm:$0xff] }
 0x308   : > { %2986 = vmatprep.subr.bf16.mxu0 %v2985_v6 }
 0x30b   : > { %2988 = vmatpush3.bf16.msra.mxu0 %v2985_v6  ;;  %v3149_v6 = vpack.c.bf16 %v1743_v5, %v1742_v4  ;;  %v1747_v4 = vld [vmem:[#allocation12 + $0xf8] sm:$0xff] }
 0x30c   : > { %2990 = vmatprep.subr.bf16.mxu0 %v2989_v9 }
 0x30f   : > { %2992 = vmatpush3.bf16.msra.mxu0 %v2989_v9  ;;  %v3153_v9 = vpack.c.bf16 %v1745_v8, %v1744_v7  ;;  %v1836_v7 = vld [vmem:[#allocation14 + $0x88] sm:$0xff] }
 0x310   : > { %2994 = vmatprep.subr.bf16.mxu0 %v2993_v12 }
 0x313   : > { %2996 = vmatpush3.bf16.msra.mxu0 %v2993_v12 }
 0x314   : > { %2998 = vmatprep.subr.bf16.mxu0 %v2997_v15 }
 0x317   : > { %3000 = vmatpush3.bf16.msra.mxu0 %v2997_v15  ;;  %v1441_v15 = vld [vmem:[#allocation11 + $0x10] sm:$0xff] }
 0x318   : > { %3002 = vmatprep.subr.bf16.mxu0 %v3001_v18 }
 0x31a   : > { %2581 = vmatmul.mubr.f32.vlgmr.msra.gmra.mrb[2].mxu0 %v1142_v22 }
 0x31b   : > { %3004 = vmatpush3.bf16.msra.mxu0 %v3001_v18  ;;  %2615 = vmatprep.mubr.f32.mxu0 %v1142_v22 }
 0x31c   : > { %3006 = vmatprep.subr.bf16.mxu0 %v3005_v21 }
 0x31f   : > { %3008 = vmatpush3.bf16.msra.mxu0 %v3005_v21  ;;  %v3069_v21 = vpack.c.bf16 %v1442_v16, %v1441_v15  ;;  %v1838_v15 = vld [vmem:[#allocation14 + $0x98] sm:$0xff] }
 0x320   : > { %3010 = vmatprep.subr.bf16.mxu0 %v3009_v25 }
 0x323   : > { %3012 = vmatpush3.bf16.msra.mxu0 %v3009_v25 }
 0x324   : > { %3014 = vmatprep.subr.bf16.mxu0 %v3013_v28 }
 0x327   : > { %3016 = vmatpush3.bf16.msra.mxu0 %v3013_v28  ;;  %v3081_v28 = vpack.c.bf16 %v1448_v27, %v1447_v58  ;;  %v1844_v58 = vld [vmem:[#allocation14 + $0xc8] sm:$0xff]  ;;  %v1845_v27 = vld [vmem:[#allocation14 + $0xd0] sm:$0xff] }
 0x328   : > { %3018 = vmatprep.subr.bf16.mxu0 %v3017_v31 }
 0x32b   : > { %3020 = vmatpush3.bf16.msra.mxu0 %v3017_v31  ;;  %v3085_v31 = vpack.c.bf16 %v1450_v30, %v1449_v29  ;;  %v1847_v29 = vld [vmem:[#allocation14 + $0xe0] sm:$0xff]  ;;  %v1848_v30 = vld [vmem:[#allocation14 + $0xe8] sm:$0xff] }
 0x32c   : > { %3022 = vmatprep.subr.bf16.mxu0 %v3021_v34 }
 0x32f   : > { %3024 = vmatpush3.bf16.msra.mxu0 %v3021_v34  ;;  %v1453_v34 = vld [vmem:[#allocation11 + $0x70] sm:$0xff] }
 0x330   : > { %3026 = vmatprep.subr.bf16.mxu0 %v3025_v39  ;;  %v3093_v38 = vpack.c.bf16 %v1454_v37, %v1453_v34  ;;  %v2114_v34 = vld [vmem:[%s4135_s15] ss:$0 sm:$0xff]  ;;  %s3524_s15 = sshll.u32 %s3610_s14, 4  ;;  %s3525_s15 = int_to_ptr.vmem [resolvable:$false] %s3524_s15 }
 0x331   : > { %s3526_s22 = scalar_lea.vmem %s3525_s15, 512  ;;  %p3527_p13 = scmp.lt.s32.totalorder %s4041_s20, %s3525_s15 }
 0x332   : > { %p3528_p0 = scmp.lt.s32.totalorder %s3526_s22, %s3520_s1 }
 0x333   : > { %3028 = vmatpush3.bf16.msra.mxu0 %v3025_v39  ;;  %v1625_v39 = vld [vmem:[#allocation11 + $0x100] sm:$0xff] }
 0x334   : > { %3030 = vmatprep.subr.bf16.mxu0 %v3029_v42  ;;  %v3097_v41 = vpack.c.bf16 %v1626_v40, %v1625_v39  ;;  %p3529_p2 = por %p3528_p0, %p3527_p13 }
 0x336   : > { %p3530_p8 = pnand %p3529_p2, %p3523_p1 }
 0x337   : > { %3032 = vmatpush3.bf16.msra.mxu0 %v3029_v42  ;;  %v1627_v42 = vld [vmem:[#allocation11 + $0x110] sm:$0xff] }
 0x338   : > { %3130 = vmatprep.subr.bf16.mxu0 %v3129_v53 }
 0x33a   : > { %2616 = vmatmul.mubr.f32.vlgmr.msra.gmra.mrb[2].mxu0 %v1327_v43  ;;  %v1628_v43 = vld [vmem:[#allocation11 + $0x118] sm:$0xff] }
 0x33b   : > { %3132 = vmatpush3.bf16.msra.mxu0 %v3129_v53  ;;  %v3101_v44 = vpack.c.bf16 %v1628_v43, %v1627_v42  ;;  %v3113_v53 = vpack.c.bf16 %v1634_v52, %v1633_v51 }
 0x33c   : > { %3134 = vmatprep.subr.bf16.mxu0 %v3133_v55 }
 0x33f   : > { %3136 = vmatpush3.bf16.msra.mxu0 %v3133_v55  ;;  %v1636_v55 = vld [vmem:[#allocation11 + $0x158] sm:$0xff] }
 0x340   : > { %3138 = vmatprep.subr.bf16.mxu0 %v3137_v60  ;;  %v3117_v56 = vpack.c.bf16 %v1636_v55, %v1635_v54 }
 0x343   : > { %3140 = vmatpush3.bf16.msra.mxu0 %v3137_v60  ;;  %v1638_v60 = vld [vmem:[#allocation11 + $0x168] sm:$0xff] }
 0x344   : > { %3142 = vmatprep.subr.bf16.mxu0 %v3141_v63  ;;  %v3121_v61 = vpack.c.bf16 %v1638_v60, %v1637_v59 }
 0x347   : > { %3144 = vmatpush3.bf16.msra.mxu0 %v3141_v63  ;;  %v1640_v63 = vld [vmem:[#allocation11 + $0x178] sm:$0xff] }
 0x348   : > { %3146 = vmatprep.subr.bf16.mxu0 %v3145_v3  ;;  %v3125_v1 = vpack.c.bf16 %v1640_v63, %v1639_v62 }
 0x34b   : > { %3148 = vmatpush3.bf16.msra.mxu0 %v3145_v3  ;;  %v1746_v3 = vld [vmem:[#allocation12 + $0xf0] sm:$0xff] }
 0x34c   : > { %3150 = vmatprep.subr.bf16.mxu0 %v3149_v6  ;;  %v3157_v5 = vpack.c.bf16 %v1747_v4, %v1746_v3 }
 0x34f   : > { %3152 = vmatpush3.bf16.msra.mxu0 %v3149_v6  ;;  %v1835_v6 = vld [vmem:[#allocation14 + $0x80] sm:$0xff] }
 0x350   : > { %3154 = vmatprep.subr.bf16.mxu0 %v3153_v9  ;;  %v3161_v8 = vpack.c.bf16 %v1836_v7, %v1835_v6 }
 0x353   : > { %3156 = vmatpush3.bf16.msra.mxu0 %v3153_v9  ;;  %v2113_v9 = vld [vmem:[%s4134_s23] ss:$0 sm:$0xff]  ;;  %s4137_s23 = sld [smem:[#allocation26_spill]] }
 0x354   : > { %3158 = vmatprep.subr.bf16.mxu0 %v3157_v5 }
 0x357   : > { %3160 = vmatpush3.bf16.msra.mxu0 %v3157_v5 }
 0x358   : > { %3162 = vmatprep.subr.bf16.mxu0 %v3161_v8 }
 0x359   : > { %s4046_s24 = scalar_lea.hbm %s4137_s23, %s2122_s21 }
 0x40d   : > { %v2617_v11 = vpop.f32.mrb[2].mxu0 }
 0x40e   : > { %v1430_v12 = vadd.f32 %v2617_v11, %v2112_v10  ;;  %v1411_v13 = vpop.f32.mrb[3].mxu0 }
 0x40f   : > { %v1429_v14 = vadd.f32 %v2112_v10, %v1411_v13 }
 0x410   : > { %v1432_v18 = vmax.f32 %v1430_v12, 0.0 }
 0x411   : > { %v1431_v20 = vmax.f32 %v1429_v14, 0.0  ;;  %v1837_v14 = vld [vmem:[#allocation14 + $0x90] sm:$0xff] }
 0x412   : > { %1436 = vst [vmem:[#allocation2 + $0x10] sm:$0xff] %v1432_v18  ;;  %v4022_v22 = vadd.f32 %v1432_v18, %v1138_v17 }
 0x413   : > { %1435 = vst [vmem:[#allocation2 + $0x8] sm:$0xff] %v1431_v20  ;;  %2650 = vmatprep.mubr.f32.mxu1 %v1431_v20  ;;  %v4024_v25 = vadd.f32 %v1431_v20, %v1137_v19  ;;  %v3165_v19 = vpack.c.bf16 %v1838_v15, %v1837_v14 }
 0x414   : > { %2651 = vmatmul.mubr.f32.vlgmr.msra.gmra.mrb[2].mxu1 %v1432_v18 }
 0x415   : > { %3068 = vmatpush3.bf16.msra.mxu1 %v3065_v49  ;;  %2685 = vmatprep.mubr.f32.mxu1 %v3609_v0  ;;  %v3089_v0 = vpack.c.bf16 %v1452_v33, %v1451_v32  ;;  %v1632_v49 = vld [vmem:[#allocation11 + $0x138] sm:$0xff]  ;;  %v1849_v32 = vld [vmem:[#allocation14 + $0xf0] sm:$0xff] }
 0x416   : > { %3070 = vmatprep.subr.bf16.mxu1 %v3069_v21  ;;  %v3109_v50 = vpack.c.bf16 %v1632_v49, %v1631_v48  ;;  %v1850_v33 = vld [vmem:[#allocation14 + $0xf8] sm:$0xff] }
 0x419   : > { %3072 = vmatpush3.bf16.msra.mxu1 %v3069_v21  ;;  %v1839_v21 = vld [vmem:[#allocation14 + $0xa0] sm:$0xff] }
 0x41a   : > { %3074 = vmatprep.subr.bf16.mxu1 %v3073_v35  ;;  %v3169_v24 = vpack.c.bf16 %v1840_v23, %v1839_v21 }
 0x41d   : > { %3076 = vmatpush3.bf16.msra.mxu1 %v3073_v35  ;;  %v1841_v35 = vld [vmem:[#allocation14 + $0xb0] sm:$0xff] }
 0x41e   : > { %3078 = vmatprep.subr.bf16.mxu1 %v3077_v36  ;;  %v3173_v26 = vpack.c.bf16 %v1842_v57, %v1841_v35 }
 0x421   : > { %3080 = vmatpush3.bf16.msra.mxu1 %v3077_v36  ;;  %v1843_v36 = vld [vmem:[#allocation14 + $0xc0] sm:$0xff] }
 0x422   : > { %3082 = vmatprep.subr.bf16.mxu1 %v3081_v28 }
 0x425   : > { %3084 = vmatpush3.bf16.msra.mxu1 %v3081_v28  ;;  %v1846_v28 = vld [vmem:[#allocation14 + $0xd8] sm:$0xff] }
 0x426   : > { %3086 = vmatprep.subr.bf16.mxu1 %v3085_v31 }
 0x429   : > { %3088 = vmatpush3.bf16.msra.mxu1 %v3085_v31  ;;  %v3185_v31 = vpack.c.bf16 %v1848_v30, %v1847_v29 }
 0x42a   : > { %3090 = vmatprep.subr.bf16.mxu1 %v3089_v0 }
 0x42d   : > { %3092 = vmatpush3.bf16.msra.mxu1 %v3089_v0  ;;  %v3189_v0 = vpack.c.bf16 %v1850_v33, %v1849_v32 }
 0x42e   : > { %3094 = vmatprep.subr.bf16.mxu1 %v3093_v38 }
 0x431   : > { %3096 = vmatpush3.bf16.msra.mxu1 %v3093_v38 }
 0x432   : > { %3098 = vmatprep.subr.bf16.mxu1 %v3097_v41 }
 0x434   : > { %2686 = vmatmul.mubr.f32.vlgmr.msra.gmra.mrb[2].mxu1 %v1431_v20 }
 0x435   : > { %3100 = vmatpush3.bf16.msra.mxu1 %v3097_v41  ;;  %2720 = vmatprep.mubr.f32.mxu1 %v1432_v18 }
 0x436   : > { %3102 = vmatprep.subr.bf16.mxu1 %v3101_v44 }
 0x439   : > { %3104 = vmatpush3.bf16.msra.mxu1 %v3101_v44 }
 0x43a   : > { %3106 = vmatprep.subr.bf16.mxu1 %v3105_v47 }
 0x43d   : > { %3108 = vmatpush3.bf16.msra.mxu1 %v3105_v47 }
 0x43e   : > { %3110 = vmatprep.subr.bf16.mxu1 %v3109_v50 }
 0x441   : > { %3112 = vmatpush3.bf16.msra.mxu1 %v3109_v50 }
 0x442   : > { %3114 = vmatprep.subr.bf16.mxu1 %v3113_v53 }
 0x445   : > { %3116 = vmatpush3.bf16.msra.mxu1 %v3113_v53 }
 0x446   : > { %3118 = vmatprep.subr.bf16.mxu1 %v3117_v56 }
 0x449   : > { %3120 = vmatpush3.bf16.msra.mxu1 %v3117_v56 }
 0x44a   : > { %3122 = vmatprep.subr.bf16.mxu1 %v3121_v61 }
 0x44d   : > { %3124 = vmatpush3.bf16.msra.mxu1 %v3121_v61 }
 0x44e   : > { %3126 = vmatprep.subr.bf16.mxu1 %v3125_v1 }
 0x451   : > { %3128 = vmatpush3.bf16.msra.mxu1 %v3125_v1 }
 0x454   : > { %2721 = vmatmul.mubr.f32.vlgmr.msra.gmra.mrb[2].mxu1 %v3321_v2 }
 0x527   : > { %v2722_v10 = vpop.f32.mrb[2].mxu1 }
 0x528   : > { %v1726_v11 = vadd.f32 %v2722_v10, %v2113_v9  ;;  %v1707_v12 = vpop.f32.mrb[3].mxu1 }
 0x529   : > { %v1725_v13 = vadd.f32 %v2113_v9, %v1707_v12 }
 0x52a   : > { %v1728_v16 = vmax.f32 %v1726_v11, 0.0 }
 0x52b   : > { %v1727_v17 = vmax.f32 %v1725_v13, 0.0 }
 0x52c   : > { %v1730_v18 = vadd.f32 %v1728_v16, %v4022_v22  ;;  %v3177_v22 = vpack.c.bf16 %v1844_v58, %v1843_v36 }
 0x52d   : > { %v1729_v20 = vadd.f32 %v1727_v17, %v4024_v25  ;;  %2755 = vmatprep.mubr.f32.mxu0 %v1727_v17  ;;  %v3181_v25 = vpack.c.bf16 %v1846_v28, %v1845_v27 }
 0x52e   : > { %2756 = vmatmul.mubr.f32.vlgmr.msra.gmra.mrb[4].mxu0 %v1728_v16 }
 0x52f   : > { %3164 = vmatpush3.bf16.msra.mxu0 %v3161_v8 }
 0x530   : > { %3166 = vmatprep.subr.bf16.mxu0 %v3165_v19 }
 0x533   : > { %3168 = vmatpush3.bf16.msra.mxu0 %v3165_v19 }
 0x534   : > { %3170 = vmatprep.subr.bf16.mxu0 %v3169_v24 }
 0x537   : > { %3172 = vmatpush3.bf16.msra.mxu0 %v3169_v24 }
 0x538   : > { %3174 = vmatprep.subr.bf16.mxu0 %v3173_v26 }
 0x53b   : > { %3176 = vmatpush3.bf16.msra.mxu0 %v3173_v26 }
 0x53c   : > { %3178 = vmatprep.subr.bf16.mxu0 %v3177_v22 }
 0x53f   : > { %3180 = vmatpush3.bf16.msra.mxu0 %v3177_v22 }
 0x540   : > { %3182 = vmatprep.subr.bf16.mxu0 %v3181_v25 }
 0x543   : > { %3184 = vmatpush3.bf16.msra.mxu0 %v3181_v25 }
 0x544   : > { %3186 = vmatprep.subr.bf16.mxu0 %v3185_v31 }
 0x547   : > { %3188 = vmatpush3.bf16.msra.mxu0 %v3185_v31 }
 0x548   : > { %3190 = vmatprep.subr.bf16.mxu0 %v3189_v0 }
 0x54b   : > { %3192 = vmatpush3.bf16.msra.mxu0 %v3189_v0 }
 0x601   : > { %v2757_v37 = vpop.f32.mrb[4].mxu0 }
 0x602   : > { %v1827_v38 = vadd.f32 %v2757_v37, %v2114_v34  ;;  %v1821_v39 = vpop.f32.mrb[5].mxu0 }
 0x603   : > { %v1822_v40 = vadd.f32 %v2114_v34, %v1821_v39 }
 0x604   : > { %v1831_v41 = vmax.f32 %v1827_v38, 0.0 }
 0x605   : > { %v1830_v42 = vmax.f32 %v1822_v40, 0.0 }
 0x606   : > { %v1833_v43 = vadd.f32 %v1831_v41, %v1730_v18 }
 0x607   : > { %v1832_v44 = vadd.f32 %v1830_v42, %v1729_v20  ;;  %2790 = vmatprep.mubr.f32.mxu0 %v1830_v42 }
 0x608   : > { %2791 = vmatmul.mubr.f32.vlgmr.msra.gmra.mrb[6].mxu0 %v1831_v41 }
 0x6db   : > { %v2792_v46 = vpop.f32.mrb[6].mxu0 }
 0x6dc   : > { %v1930_v47 = vadd.f32 %v2792_v46, %v2115_v45  ;;  %v1924_v48 = vpop.f32.mrb[7].mxu0 }
 0x6dd   : > { %v1925_v49 = vadd.f32 %v2115_v45, %v1924_v48 }
 0x6de   : > { %v1934_v50 = vmax.f32 %v1930_v47, 0.0 }
 0x6df   : > { %v1933_v51 = vmax.f32 %v1925_v49, 0.0 }
 0x6e0   : > { %v1936_v52 = vadd.f32 %v1934_v50, %v1833_v43 }
 0x6e1   : > { %v1935_v53 = vadd.f32 %v1933_v51, %v1832_v44 }
 0x6e2   : > { %1938 = vst [vmem:[%s545_s11 + $0x8] sm:$0xff] %v1936_v52 }
 0x6e3   : > { %1937 = vst [vmem:[%s545_s11] sm:$0xff] %v1935_v53 }
 0x6e4   : > { %3533 = shalt.err (!%p3530_p8)
}
 0x6e5   : > { %s3534_s13 = scalar_lea.hbm %s4046_s24, 256  ;;  %s3538_s21 = scalar_lea.hbm %s4137_s23, 512 }
 0x6e6   : > { %p3535_p4 = scmp.ne.s32.totalorder %s4046_s24, %s3534_s13  ;;  %p3539_p3 = scmp.lt.u32.totalorder %s4046_s24, %s4137_s23 }
 0x6e7   : > { %p3540_p5 = scmp.lt.u32.totalorder %s3538_s21, %s3534_s13  ;;  %p3542_p6 = scmp.lt.u32.totalorder %s3534_s13, %s4046_s24 }
 0x6e8   : > { %p3536_p10 = pnand %p3535_p4, %p4138_p9 }
 0x6e9   : > { %p3541_p7 = por %p3540_p5, %p3539_p3 }
 0x6ea   : > { %p3537_p11 = pneg %p3536_p10 }
 0x6eb   : > { %p3543_p12 = por %p3542_p6, %p3541_p7 }
 0x6ed   : > { %p3544_p1 = pnand %p3543_p12, %p3537_p11 }
 0x6ef   : > { %3547 = shalt.err (!%p3544_p1)
}
 0x6f0   : > { %s3611_s1 = smov 128   ;;  %s3612_s14 = smov 8  }
 0x6f1   : > { %3235 = dma.vmem_to_hbm [thread:$0]  (%p4138_p9), %s4041_s20, 256, %s4046_s24, %s1940_s18, %s3611_s1, %s3611_s1, %s3612_s14  }
 0x6f2 PF: > { %s1968_s15 = sand.u32 1, %s3586_s25   ;;  %p4139_p13 = scmp.ne.s32.totalorder %s4123_s19, 0 }
 0x6f3   : > { %p4140_p0 = scmp.ge.s32.totalorder %s3598_s28, 2  ;;  %s1969_s22 = scalar_lea.sflag [#allocation5], %s1968_s15 }
 0x6f5   : > { %p3261_p2 = pnand %p4140_p0, %p4139_p13 }
 0x6f7   : > { %3581 = dma.done.wait (!%p3261_p2), %s1969_s22, 256  }
 0x6f8   : > { %3583 = vsyncadd (!%p3261_p2), %s1969_s22, 4294967040  ;;  %p29_p8 = scmp.ge.s32.totalorder %s3877_s16, 4   ;;  %s4141_s25 = smov %s3590_s26 }
 0x6f9   : > { %s4142_s26 = smov %s3594_s27  ;;  %s4143_s27 = smov %s3888_s10 }
 0x6fa   : > { %s4144_s28 = smov %s3877_s16  ;;  %31 = sbr.rel (!%p29_p8) target bundleno = 15 (0xf), region = 151 }
 0x701   :  { %1974 = vsyncpa [#allocation4], 1 }
 0x702   :  { %1976 = vsyncpa [#allocation4 + $0x1], 1 }
 0x703   :  { %1977 = vsyncpa [#allocation7], 1 }
 0x704   :  { %1978 = vsyncpa [#allocation10], 1 }
 0x705   :  { %1979 = vsyncpa [#allocation13], 1 }
 0x706   :  { %1980 = vsyncpa [#allocation5], 1 }
 0x707   :  { %1982 = vsyncpa [#allocation5 + $0x1], 1 }

</bundles_post_ra>
